<compile_context>
chip_gen: v6e
topology: v6e:2x2x1
jax: 0.10.0
libtpu: 0.0.40
codegen_flags: <defaults>
</compile_context>

<pallas_src>
import functools

import jax
import jax.numpy as jnp
from jax.experimental import pallas as pl
from jax.experimental.pallas import tpu as pltpu


def _fused_lstm_kernel(*refs, num_layers, hidden_size, seq_len):
    """All layers + all timesteps in one invocation.

    refs layout:
      refs[0]                              x_tm    (T, B, I)    f32 (time-major)
      refs[1+3l], refs[2+3l], refs[3+3l]   W_ih^T (F,4H) f32, W_hh^T (H,4H) bf16, b (1,4H) f32
      refs[1+3L]                           out     (B, H)       f32
      refs[2+3L]                           xp scratch (T, B, 4H) f32
      refs[3+3L]                           hs scratch (T, B, H)  f32
    """
    H = hidden_size
    T = seq_len
    x_ref = refs[0]
    out_ref = refs[1 + 3 * num_layers]
    xp_ref = refs[2 + 3 * num_layers]
    hs_ref = refs[3 + 3 * num_layers]
    B = x_ref.shape[1]

    h = jnp.zeros((B, H), jnp.float32)
    for layer in range(num_layers):
        wih = refs[1 + 3 * layer][...]               # (F, 4H) f32
        whh = refs[2 + 3 * layer][...]               # (H, 4H) bf16
        b = refs[3 + 3 * layer][...]                 # (1, 4H) f32

        # Hoisted input projection for the whole sequence, OFF the serial
        # recurrence path.  Leading-dim reads/stores only; f32 precision.
        in_ref = x_ref if layer == 0 else hs_ref
        for t in range(T):
            xp_ref[t] = jnp.dot(in_ref[t], wih,
                                preferred_element_type=jnp.float32) + b

        h = jnp.zeros((B, H), jnp.float32)
        c = jnp.zeros((B, H), jnp.float32)
        # Serial recurrence, fully unrolled (T is small & static).
        # TODO(synk): convert to lax.fori_loop(..., unroll=2..4) over the VMEM
        #             scratch if T grows beyond a handful of steps.
        for t in range(T):
            # Single-pass bf16 MXU matmul on the critical path (f32 accumulate);
            # dot-then-add so xp[t] folds onto the MXU result path.
            gates = jnp.dot(h.astype(jnp.bfloat16), whh,
                            preferred_element_type=jnp.float32) + xp_ref[t]
            # Full-width activations (EUP has slack), slice per-gate afterwards.
            sg = jax.nn.sigmoid(gates)               # (B, 4H)
            tg = jnp.tanh(gates)                     # (B, 4H)
            i_g = sg[:, 0 * H:1 * H]                 # PyTorch gate order i,f,g,o
            f_g = sg[:, 1 * H:2 * H]
            g_g = tg[:, 2 * H:3 * H]
            o_g = sg[:, 3 * H:4 * H]
            c = f_g * c + i_g * g_g
            h = o_g * jnp.tanh(c)
            if layer < num_layers - 1:
                hs_ref[t] = h                        # stays on-chip for next layer

    # out[:, -1, :] of the top layer == last-timestep hidden state.
    # (B, H) = (2, 32) is a lane-sparse masked store, written exactly once.
    out_ref[...] = h.astype(out_ref.dtype)


def lstm_embedding_forward(x_btf, params):
    """LSTMEmbedding.forward: x (B, T, input_size) -> (B, hidden_size)."""
    B, T, _ = x_btf.shape
    H = params[0]["whh_t"].shape[0]
    L = len(params)

    # Time-major layout built in the wrapper (free-ish XLA transpose, off the
    # kernel's serial path).
    x_tm = jnp.transpose(x_btf, (1, 0, 2)).astype(jnp.float32)    # (T, B, I)

    args = [x_tm]
    for p in params:
        args.append(p["wih_t"].astype(jnp.float32))               # (F, 4H) f32
        args.append(p["whh_t"].astype(jnp.bfloat16))               # (H, 4H) bf16 (recurrence)
        args.append(p["b"].reshape(1, 4 * H).astype(jnp.float32))  # (1, 4H) f32

    kernel = functools.partial(_fused_lstm_kernel, num_layers=L,
                               hidden_size=H, seq_len=T)
    vmem = pl.BlockSpec(memory_space=pltpu.MemorySpace.VMEM)
    return pl.pallas_call(
        kernel,
        out_shape=jax.ShapeDtypeStruct((B, H), jnp.float32),
        in_specs=[vmem] * len(args),
        out_specs=vmem,
        scratch_shapes=[
            pltpu.VMEM((T, B, 4 * H), jnp.float32),   # hoisted input projection
            pltpu.VMEM((T, B, H), jnp.float32),       # inter-layer hidden sequence
        ],
        compiler_params=pltpu.CompilerParams(
            # Everything is VMEM resident; keep an explicit scoped-VMEM budget
            # so the no-grid design stays portable to v7x (64 MiB physical).
            vmem_limit_bytes=32 * 1024 * 1024),
    )(*args)


def init_lstm_params(key, input_size, hidden_size, num_layers):
    """Deterministic init matching PyTorch nn.LSTM shapes (uniform(-k, k), k=1/sqrt(H))."""
    k = 1.0 / jnp.sqrt(jnp.float32(hidden_size))
    params = []
    for layer in range(num_layers):
        in_sz = input_size if layer == 0 else hidden_size
        key, k1, k2, k3, k4 = jax.random.split(key, 5)
        w_ih = jax.random.uniform(k1, (4 * hidden_size, in_sz), jnp.float32, -k, k)
        w_hh = jax.random.uniform(k2, (4 * hidden_size, hidden_size), jnp.float32, -k, k)
        b_ih = jax.random.uniform(k3, (4 * hidden_size,), jnp.float32, -k, k)
        b_hh = jax.random.uniform(k4, (4 * hidden_size,), jnp.float32, -k, k)
        params.append({
            "wih_t": w_ih.T,          # (in_sz, 4H)
            "whh_t": w_hh.T,          # (H, 4H)
            "b": b_ih + b_hh,         # (4H,)
        })
    return params


def _reference_forward(x_btf, params):
    """Pure-JAX f32 reference (lax.scan) for verification."""
    h_seq = jnp.transpose(x_btf, (1, 0, 2)).astype(jnp.float32)   # (T, B, I)
    hp = jax.lax.Precision.HIGHEST
    for layer in params:
        H = layer["whh_t"].shape[0]
        B = h_seq.shape[1]

        def step(carry, x_t, layer=layer, H=H):
            h, c = carry
            gates = (jnp.dot(x_t, layer["wih_t"], precision=hp)
                     + jnp.dot(h, layer["whh_t"], precision=hp)
                     + layer["b"][None, :])
            i_g = jax.nn.sigmoid(gates[:, 0 * H:1 * H])
            f_g = jax.nn.sigmoid(gates[:, 1 * H:2 * H])
            g_g = jnp.tanh(gates[:, 2 * H:3 * H])
            o_g = jax.nn.sigmoid(gates[:, 3 * H:4 * H])
            c_new = f_g * c + i_g * g_g
            h_new = o_g * jnp.tanh(c_new)
            return (h_new, c_new), h_new

        init = (jnp.zeros((B, H), jnp.float32), jnp.zeros((B, H), jnp.float32))
        _, h_seq = jax.lax.scan(step, init, h_seq)
    return h_seq[-1]


if __name__ == "__main__":
    # Module config: LSTMEmbedding(input_size=16, hidden_size=32, num_layers=2)
    B, T, INPUT_SIZE, HIDDEN_SIZE, NUM_LAYERS = 2, 8, 16, 32, 2

    key = jax.random.PRNGKey(0)
    key_x, key_p = jax.random.split(key)
    x = jax.random.normal(key_x, (B, T, INPUT_SIZE), dtype=jnp.float32)
    params = init_lstm_params(key_p, INPUT_SIZE, HIDDEN_SIZE, NUM_LAYERS)

    fwd = jax.jit(lstm_embedding_forward)
    out = jax.block_until_ready(fwd(x, params))
    assert out.shape == (B, HIDDEN_SIZE), out.shape

    ref = jax.block_until_ready(_reference_forward(x, params))
    # bf16 recurrence matmul (perf change) -> relaxed tolerance vs f32 reference.
    max_err = float(jnp.max(jnp.abs(out - ref)))
    assert jnp.allclose(out, ref, atol=2e-2, rtol=2e-2), max_err

    print("KERNEL_OK")
</pallas_src>

<mosaic_0001>
module attributes {stable_mosaic.version = 11 : i64} {
  func.func @_fused_lstm_kernel(%arg0: memref<8x2x16xf32, #tpu.memory_space<vmem>>, %arg1: memref<16x128xf32, #tpu.memory_space<vmem>>, %arg2: memref<32x128xbf16, #tpu.memory_space<vmem>>, %arg3: memref<1x128xf32, #tpu.memory_space<vmem>>, %arg4: memref<32x128xf32, #tpu.memory_space<vmem>>, %arg5: memref<32x128xbf16, #tpu.memory_space<vmem>>, %arg6: memref<1x128xf32, #tpu.memory_space<vmem>>, %arg7: memref<2x32xf32, #tpu.memory_space<vmem>>, %arg8: memref<8x2x128xf32, #tpu.memory_space<vmem>>, %arg9: memref<8x2x32xf32, #tpu.memory_space<vmem>>) attributes {dimension_semantics = [], scalar_prefetch = 0 : i64, scratch_operands = 2 : i64, tpu.core_type = #tpu.core_type<tc>} {
    %c0 = arith.constant 0 : index
    %c0_0 = arith.constant 0 : index
    %0 = vector.load %arg1[%c0, %c0_0] : memref<16x128xf32, #tpu.memory_space<vmem>>, vector<16x128xf32>
    %c0_1 = arith.constant 0 : index
    %c0_2 = arith.constant 0 : index
    %1 = vector.load %arg2[%c0_1, %c0_2] : memref<32x128xbf16, #tpu.memory_space<vmem>>, vector<32x128xbf16>
    %c0_3 = arith.constant 0 : index
    %c0_4 = arith.constant 0 : index
    %2 = vector.load %arg3[%c0_3, %c0_4] : memref<1x128xf32, #tpu.memory_space<vmem>>, vector<1x128xf32>
    %c0_5 = arith.constant 0 : index
    %c0_6 = arith.constant 0 : index
    %c0_7 = arith.constant 0 : index
    %3 = vector.load %arg0[%c0_5, %c0_6, %c0_7] : memref<8x2x16xf32, #tpu.memory_space<vmem>>, vector<1x2x16xf32>
    %4 = vector.shape_cast %3 : vector<1x2x16xf32> to vector<2x16xf32>
    %cst = arith.constant dense<0.000000e+00> : vector<2x128xf32>
    %5 = tpu.matmul %4, %0, %cst {dimension_numbers = #tpu.dot_dimension_numbers<[1], [0], [0], [1], [0, 0, 1, 1], [], []>} : vector<2x16xf32>, vector<16x128xf32>, vector<2x128xf32> -> vector<2x128xf32>
    %6 = vector.broadcast %2 : vector<1x128xf32> to vector<2x128xf32>
    %7 = arith.addf %5, %6 : vector<2x128xf32>
    %c0_8 = arith.constant 0 : index
    %c0_9 = arith.constant 0 : index
    %c0_10 = arith.constant 0 : index
    %8 = vector.load %arg8[%c0_8, %c0_9, %c0_10] : memref<8x2x128xf32, #tpu.memory_space<vmem>>, vector<1x2x128xf32>
    %9 = vector.shape_cast %8 : vector<1x2x128xf32> to vector<2x128xf32>
    %10 = vector.shape_cast %7 : vector<2x128xf32> to vector<1x2x128xf32>
    tpu.vector_store %arg8[%c0_8, %c0_9, %c0_10], %10 {strides = array<i32>} : memref<8x2x128xf32, #tpu.memory_space<vmem>>, vector<1x2x128xf32>,
    %c1 = arith.constant 1 : index
    %c0_11 = arith.constant 0 : index
    %c0_12 = arith.constant 0 : index
    %11 = vector.load %arg0[%c1, %c0_11, %c0_12] : memref<8x2x16xf32, #tpu.memory_space<vmem>>, vector<1x2x16xf32>
    %12 = vector.shape_cast %11 : vector<1x2x16xf32> to vector<2x16xf32>
    %cst_13 = arith.constant dense<0.000000e+00> : vector<2x128xf32>
    %13 = tpu.matmul %12, %0, %cst_13 {dimension_numbers = #tpu.dot_dimension_numbers<[1], [0], [0], [1], [0, 0, 1, 1], [], []>} : vector<2x16xf32>, vector<16x128xf32>, vector<2x128xf32> -> vector<2x128xf32>
    %14 = vector.broadcast %2 : vector<1x128xf32> to vector<2x128xf32>
    %15 = arith.addf %13, %14 : vector<2x128xf32>
    %c1_14 = arith.constant 1 : index
    %c0_15 = arith.constant 0 : index
    %c0_16 = arith.constant 0 : index
    %16 = vector.load %arg8[%c1_14, %c0_15, %c0_16] : memref<8x2x128xf32, #tpu.memory_space<vmem>>, vector<1x2x128xf32>
    %17 = vector.shape_cast %16 : vector<1x2x128xf32> to vector<2x128xf32>
    %18 = vector.shape_cast %15 : vector<2x128xf32> to vector<1x2x128xf32>
    tpu.vector_store %arg8[%c1_14, %c0_15, %c0_16], %18 {strides = array<i32>} : memref<8x2x128xf32, #tpu.memory_space<vmem>>, vector<1x2x128xf32>,
    %c2 = arith.constant 2 : index
    %c0_17 = arith.constant 0 : index
    %c0_18 = arith.constant 0 : index
    %19 = vector.load %arg0[%c2, %c0_17, %c0_18] : memref<8x2x16xf32, #tpu.memory_space<vmem>>, vector<1x2x16xf32>
    %20 = vector.shape_cast %19 : vector<1x2x16xf32> to vector<2x16xf32>
    %cst_19 = arith.constant dense<0.000000e+00> : vector<2x128xf32>
    %21 = tpu.matmul %20, %0, %cst_19 {dimension_numbers = #tpu.dot_dimension_numbers<[1], [0], [0], [1], [0, 0, 1, 1], [], []>} : vector<2x16xf32>, vector<16x128xf32>, vector<2x128xf32> -> vector<2x128xf32>
    %22 = vector.broadcast %2 : vector<1x128xf32> to vector<2x128xf32>
    %23 = arith.addf %21, %22 : vector<2x128xf32>
    %c2_20 = arith.constant 2 : index
    %c0_21 = arith.constant 0 : index
    %c0_22 = arith.constant 0 : index
    %24 = vector.load %arg8[%c2_20, %c0_21, %c0_22] : memref<8x2x128xf32, #tpu.memory_space<vmem>>, vector<1x2x128xf32>
    %25 = vector.shape_cast %24 : vector<1x2x128xf32> to vector<2x128xf32>
    %26 = vector.shape_cast %23 : vector<2x128xf32> to vector<1x2x128xf32>
    tpu.vector_store %arg8[%c2_20, %c0_21, %c0_22], %26 {strides = array<i32>} : memref<8x2x128xf32, #tpu.memory_space<vmem>>, vector<1x2x128xf32>,
    %c3 = arith.constant 3 : index
    %c0_23 = arith.constant 0 : index
    %c0_24 = arith.constant 0 : index
    %27 = vector.load %arg0[%c3, %c0_23, %c0_24] : memref<8x2x16xf32, #tpu.memory_space<vmem>>, vector<1x2x16xf32>
    %28 = vector.shape_cast %27 : vector<1x2x16xf32> to vector<2x16xf32>
    %cst_25 = arith.constant dense<0.000000e+00> : vector<2x128xf32>
    %29 = tpu.matmul %28, %0, %cst_25 {dimension_numbers = #tpu.dot_dimension_numbers<[1], [0], [0], [1], [0, 0, 1, 1], [], []>} : vector<2x16xf32>, vector<16x128xf32>, vector<2x128xf32> -> vector<2x128xf32>
    %30 = vector.broadcast %2 : vector<1x128xf32> to vector<2x128xf32>
    %31 = arith.addf %29, %30 : vector<2x128xf32>
    %c3_26 = arith.constant 3 : index
    %c0_27 = arith.constant 0 : index
    %c0_28 = arith.constant 0 : index
    %32 = vector.load %arg8[%c3_26, %c0_27, %c0_28] : memref<8x2x128xf32, #tpu.memory_space<vmem>>, vector<1x2x128xf32>
    %33 = vector.shape_cast %32 : vector<1x2x128xf32> to vector<2x128xf32>
    %34 = vector.shape_cast %31 : vector<2x128xf32> to vector<1x2x128xf32>
    tpu.vector_store %arg8[%c3_26, %c0_27, %c0_28], %34 {strides = array<i32>} : memref<8x2x128xf32, #tpu.memory_space<vmem>>, vector<1x2x128xf32>,
    %c4 = arith.constant 4 : index
    %c0_29 = arith.constant 0 : index
    %c0_30 = arith.constant 0 : index
    %35 = vector.load %arg0[%c4, %c0_29, %c0_30] : memref<8x2x16xf32, #tpu.memory_space<vmem>>, vector<1x2x16xf32>
    %36 = vector.shape_cast %35 : vector<1x2x16xf32> to vector<2x16xf32>
    %cst_31 = arith.constant dense<0.000000e+00> : vector<2x128xf32>
    %37 = tpu.matmul %36, %0, %cst_31 {dimension_numbers = #tpu.dot_dimension_numbers<[1], [0], [0], [1], [0, 0, 1, 1], [], []>} : vector<2x16xf32>, vector<16x128xf32>, vector<2x128xf32> -> vector<2x128xf32>
    %38 = vector.broadcast %2 : vector<1x128xf32> to vector<2x128xf32>
    %39 = arith.addf %37, %38 : vector<2x128xf32>
    %c4_32 = arith.constant 4 : index
    %c0_33 = arith.constant 0 : index
    %c0_34 = arith.constant 0 : index
    %40 = vector.load %arg8[%c4_32, %c0_33, %c0_34] : memref<8x2x128xf32, #tpu.memory_space<vmem>>, vector<1x2x128xf32>
    %41 = vector.shape_cast %40 : vector<1x2x128xf32> to vector<2x128xf32>
    %42 = vector.shape_cast %39 : vector<2x128xf32> to vector<1x2x128xf32>
    tpu.vector_store %arg8[%c4_32, %c0_33, %c0_34], %42 {strides = array<i32>} : memref<8x2x128xf32, #tpu.memory_space<vmem>>, vector<1x2x128xf32>,
    %c5 = arith.constant 5 : index
    %c0_35 = arith.constant 0 : index
    %c0_36 = arith.constant 0 : index
    %43 = vector.load %arg0[%c5, %c0_35, %c0_36] : memref<8x2x16xf32, #tpu.memory_space<vmem>>, vector<1x2x16xf32>
    %44 = vector.shape_cast %43 : vector<1x2x16xf32> to vector<2x16xf32>
    %cst_37 = arith.constant dense<0.000000e+00> : vector<2x128xf32>
    %45 = tpu.matmul %44, %0, %cst_37 {dimension_numbers = #tpu.dot_dimension_numbers<[1], [0], [0], [1], [0, 0, 1, 1], [], []>} : vector<2x16xf32>, vector<16x128xf32>, vector<2x128xf32> -> vector<2x128xf32>
    %46 = vector.broadcast %2 : vector<1x128xf32> to vector<2x128xf32>
    %47 = arith.addf %45, %46 : vector<2x128xf32>
    %c5_38 = arith.constant 5 : index
    %c0_39 = arith.constant 0 : index
    %c0_40 = arith.constant 0 : index
    %48 = vector.load %arg8[%c5_38, %c0_39, %c0_40] : memref<8x2x128xf32, #tpu.memory_space<vmem>>, vector<1x2x128xf32>
    %49 = vector.shape_cast %48 : vector<1x2x128xf32> to vector<2x128xf32>
    %50 = vector.shape_cast %47 : vector<2x128xf32> to vector<1x2x128xf32>
    tpu.vector_store %arg8[%c5_38, %c0_39, %c0_40], %50 {strides = array<i32>} : memref<8x2x128xf32, #tpu.memory_space<vmem>>, vector<1x2x128xf32>,
    %c6 = arith.constant 6 : index
    %c0_41 = arith.constant 0 : index
    %c0_42 = arith.constant 0 : index
    %51 = vector.load %arg0[%c6, %c0_41, %c0_42] : memref<8x2x16xf32, #tpu.memory_space<vmem>>, vector<1x2x16xf32>
    %52 = vector.shape_cast %51 : vector<1x2x16xf32> to vector<2x16xf32>
    %cst_43 = arith.constant dense<0.000000e+00> : vector<2x128xf32>
    %53 = tpu.matmul %52, %0, %cst_43 {dimension_numbers = #tpu.dot_dimension_numbers<[1], [0], [0], [1], [0, 0, 1, 1], [], []>} : vector<2x16xf32>, vector<16x128xf32>, vector<2x128xf32> -> vector<2x128xf32>
    %54 = vector.broadcast %2 : vector<1x128xf32> to vector<2x128xf32>
    %55 = arith.addf %53, %54 : vector<2x128xf32>
    %c6_44 = arith.constant 6 : index
    %c0_45 = arith.constant 0 : index
    %c0_46 = arith.constant 0 : index
    %56 = vector.load %arg8[%c6_44, %c0_45, %c0_46] : memref<8x2x128xf32, #tpu.memory_space<vmem>>, vector<1x2x128xf32>
    %57 = vector.shape_cast %56 : vector<1x2x128xf32> to vector<2x128xf32>
    %58 = vector.shape_cast %55 : vector<2x128xf32> to vector<1x2x128xf32>
    tpu.vector_store %arg8[%c6_44, %c0_45, %c0_46], %58 {strides = array<i32>} : memref<8x2x128xf32, #tpu.memory_space<vmem>>, vector<1x2x128xf32>,
    %c7 = arith.constant 7 : index
    %c0_47 = arith.constant 0 : index
    %c0_48 = arith.constant 0 : index
    %59 = vector.load %arg0[%c7, %c0_47, %c0_48] : memref<8x2x16xf32, #tpu.memory_space<vmem>>, vector<1x2x16xf32>
    %60 = vector.shape_cast %59 : vector<1x2x16xf32> to vector<2x16xf32>
    %cst_49 = arith.constant dense<0.000000e+00> : vector<2x128xf32>
    %61 = tpu.matmul %60, %0, %cst_49 {dimension_numbers = #tpu.dot_dimension_numbers<[1], [0], [0], [1], [0, 0, 1, 1], [], []>} : vector<2x16xf32>, vector<16x128xf32>, vector<2x128xf32> -> vector<2x128xf32>
    %62 = vector.broadcast %2 : vector<1x128xf32> to vector<2x128xf32>
    %63 = arith.addf %61, %62 : vector<2x128xf32>
    %c7_50 = arith.constant 7 : index
    %c0_51 = arith.constant 0 : index
    %c0_52 = arith.constant 0 : index
    %64 = vector.load %arg8[%c7_50, %c0_51, %c0_52] : memref<8x2x128xf32, #tpu.memory_space<vmem>>, vector<1x2x128xf32>
    %65 = vector.shape_cast %64 : vector<1x2x128xf32> to vector<2x128xf32>
    %66 = vector.shape_cast %63 : vector<2x128xf32> to vector<1x2x128xf32>
    tpu.vector_store %arg8[%c7_50, %c0_51, %c0_52], %66 {strides = array<i32>} : memref<8x2x128xf32, #tpu.memory_space<vmem>>, vector<1x2x128xf32>,
    %cst_53 = arith.constant 0.000000e+00 : f32
    %67 = vector.broadcast %cst_53 : f32 to vector<2x32xf32>
    %cst_54 = arith.constant 0.000000e+00 : f32
    %68 = vector.broadcast %cst_54 : f32 to vector<2x32xf32>
    %69 = arith.truncf %67 : vector<2x32xf32> to vector<2x32xbf16>
    %cst_55 = arith.constant dense<0.000000e+00> : vector<2x128xf32>
    %70 = tpu.matmul %69, %1, %cst_55 {dimension_numbers = #tpu.dot_dimension_numbers<[1], [0], [0], [1], [0, 0, 1, 1], [], []>} : vector<2x32xbf16>, vector<32x128xbf16>, vector<2x128xf32> -> vector<2x128xf32>
    %c0_56 = arith.constant 0 : index
    %c0_57 = arith.constant 0 : index
    %c0_58 = arith.constant 0 : index
    %71 = vector.load %arg8[%c0_56, %c0_57, %c0_58] : memref<8x2x128xf32, #tpu.memory_space<vmem>>, vector<1x2x128xf32>
    %72 = vector.shape_cast %71 : vector<1x2x128xf32> to vector<2x128xf32>
    %73 = arith.addf %70, %72 : vector<2x128xf32>
    %74 = arith.negf %73 : vector<2x128xf32>
    %75 = math.exp %74 : vector<2x128xf32>
    %cst_59 = arith.constant 1.000000e+00 : f32
    %76 = vector.broadcast %cst_59 : f32 to vector<2x128xf32>
    %77 = arith.addf %76, %75 : vector<2x128xf32>
    %78 = arith.divf %76, %77 : vector<2x128xf32>
    %79 = math.tanh %73 : vector<2x128xf32>
    %80 = vector.extract_strided_slice %78 {offsets = [0, 0], sizes = [2, 32], strides = [1, 1]} : vector<2x128xf32> to vector<2x32xf32>
    %81 = vector.extract_strided_slice %78 {offsets = [0, 32], sizes = [2, 32], strides = [1, 1]} : vector<2x128xf32> to vector<2x32xf32>
    %82 = vector.extract_strided_slice %79 {offsets = [0, 64], sizes = [2, 32], strides = [1, 1]} : vector<2x128xf32> to vector<2x32xf32>
    %83 = vector.extract_strided_slice %78 {offsets = [0, 96], sizes = [2, 32], strides = [1, 1]} : vector<2x128xf32> to vector<2x32xf32>
    %84 = arith.mulf %81, %68 : vector<2x32xf32>
    %85 = arith.mulf %80, %82 : vector<2x32xf32>
    %86 = arith.addf %84, %85 : vector<2x32xf32>
    %87 = math.tanh %86 : vector<2x32xf32>
    %88 = arith.mulf %83, %87 : vector<2x32xf32>
    %c0_60 = arith.constant 0 : index
    %c0_61 = arith.constant 0 : index
    %c0_62 = arith.constant 0 : index
    %89 = vector.load %arg9[%c0_60, %c0_61, %c0_62] : memref<8x2x32xf32, #tpu.memory_space<vmem>>, vector<1x2x32xf32>
    %90 = vector.shape_cast %89 : vector<1x2x32xf32> to vector<2x32xf32>
    %91 = vector.shape_cast %88 : vector<2x32xf32> to vector<1x2x32xf32>
    tpu.vector_store %arg9[%c0_60, %c0_61, %c0_62], %91 {strides = array<i32>} : memref<8x2x32xf32, #tpu.memory_space<vmem>>, vector<1x2x32xf32>,
    %92 = arith.truncf %88 : vector<2x32xf32> to vector<2x32xbf16>
    %cst_63 = arith.constant dense<0.000000e+00> : vector<2x128xf32>
    %93 = tpu.matmul %92, %1, %cst_63 {dimension_numbers = #tpu.dot_dimension_numbers<[1], [0], [0], [1], [0, 0, 1, 1], [], []>} : vector<2x32xbf16>, vector<32x128xbf16>, vector<2x128xf32> -> vector<2x128xf32>
    %c1_64 = arith.constant 1 : index
    %c0_65 = arith.constant 0 : index
    %c0_66 = arith.constant 0 : index
    %94 = vector.load %arg8[%c1_64, %c0_65, %c0_66] : memref<8x2x128xf32, #tpu.memory_space<vmem>>, vector<1x2x128xf32>
    %95 = vector.shape_cast %94 : vector<1x2x128xf32> to vector<2x128xf32>
    %96 = arith.addf %93, %95 : vector<2x128xf32>
    %97 = arith.negf %96 : vector<2x128xf32>
    %98 = math.exp %97 : vector<2x128xf32>
    %cst_67 = arith.constant 1.000000e+00 : f32
    %99 = vector.broadcast %cst_67 : f32 to vector<2x128xf32>
    %100 = arith.addf %99, %98 : vector<2x128xf32>
    %101 = arith.divf %99, %100 : vector<2x128xf32>
    %102 = math.tanh %96 : vector<2x128xf32>
    %103 = vector.extract_strided_slice %101 {offsets = [0, 0], sizes = [2, 32], strides = [1, 1]} : vector<2x128xf32> to vector<2x32xf32>
    %104 = vector.extract_strided_slice %101 {offsets = [0, 32], sizes = [2, 32], strides = [1, 1]} : vector<2x128xf32> to vector<2x32xf32>
    %105 = vector.extract_strided_slice %102 {offsets = [0, 64], sizes = [2, 32], strides = [1, 1]} : vector<2x128xf32> to vector<2x32xf32>
    %106 = vector.extract_strided_slice %101 {offsets = [0, 96], sizes = [2, 32], strides = [1, 1]} : vector<2x128xf32> to vector<2x32xf32>
    %107 = arith.mulf %104, %86 : vector<2x32xf32>
    %108 = arith.mulf %103, %105 : vector<2x32xf32>
    %109 = arith.addf %107, %108 : vector<2x32xf32>
    %110 = math.tanh %109 : vector<2x32xf32>
    %111 = arith.mulf %106, %110 : vector<2x32xf32>
    %c1_68 = arith.constant 1 : index
    %c0_69 = arith.constant 0 : index
    %c0_70 = arith.constant 0 : index
    %112 = vector.load %arg9[%c1_68, %c0_69, %c0_70] : memref<8x2x32xf32, #tpu.memory_space<vmem>>, vector<1x2x32xf32>
    %113 = vector.shape_cast %112 : vector<1x2x32xf32> to vector<2x32xf32>
    %114 = vector.shape_cast %111 : vector<2x32xf32> to vector<1x2x32xf32>
    tpu.vector_store %arg9[%c1_68, %c0_69, %c0_70], %114 {strides = array<i32>} : memref<8x2x32xf32, #tpu.memory_space<vmem>>, vector<1x2x32xf32>,
    %115 = arith.truncf %111 : vector<2x32xf32> to vector<2x32xbf16>
    %cst_71 = arith.constant dense<0.000000e+00> : vector<2x128xf32>
    %116 = tpu.matmul %115, %1, %cst_71 {dimension_numbers = #tpu.dot_dimension_numbers<[1], [0], [0], [1], [0, 0, 1, 1], [], []>} : vector<2x32xbf16>, vector<32x128xbf16>, vector<2x128xf32> -> vector<2x128xf32>
    %c2_72 = arith.constant 2 : index
    %c0_73 = arith.constant 0 : index
    %c0_74 = arith.constant 0 : index
    %117 = vector.load %arg8[%c2_72, %c0_73, %c0_74] : memref<8x2x128xf32, #tpu.memory_space<vmem>>, vector<1x2x128xf32>
    %118 = vector.shape_cast %117 : vector<1x2x128xf32> to vector<2x128xf32>
    %119 = arith.addf %116, %118 : vector<2x128xf32>
    %120 = arith.negf %119 : vector<2x128xf32>
    %121 = math.exp %120 : vector<2x128xf32>
    %cst_75 = arith.constant 1.000000e+00 : f32
    %122 = vector.broadcast %cst_75 : f32 to vector<2x128xf32>
    %123 = arith.addf %122, %121 : vector<2x128xf32>
    %124 = arith.divf %122, %123 : vector<2x128xf32>
    %125 = math.tanh %119 : vector<2x128xf32>
    %126 = vector.extract_strided_slice %124 {offsets = [0, 0], sizes = [2, 32], strides = [1, 1]} : vector<2x128xf32> to vector<2x32xf32>
    %127 = vector.extract_strided_slice %124 {offsets = [0, 32], sizes = [2, 32], strides = [1, 1]} : vector<2x128xf32> to vector<2x32xf32>
    %128 = vector.extract_strided_slice %125 {offsets = [0, 64], sizes = [2, 32], strides = [1, 1]} : vector<2x128xf32> to vector<2x32xf32>
    %129 = vector.extract_strided_slice %124 {offsets = [0, 96], sizes = [2, 32], strides = [1, 1]} : vector<2x128xf32> to vector<2x32xf32>
    %130 = arith.mulf %127, %109 : vector<2x32xf32>
    %131 = arith.mulf %126, %128 : vector<2x32xf32>
    %132 = arith.addf %130, %131 : vector<2x32xf32>
    %133 = math.tanh %132 : vector<2x32xf32>
    %134 = arith.mulf %129, %133 : vector<2x32xf32>
    %c2_76 = arith.constant 2 : index
    %c0_77 = arith.constant 0 : index
    %c0_78 = arith.constant 0 : index
    %135 = vector.load %arg9[%c2_76, %c0_77, %c0_78] : memref<8x2x32xf32, #tpu.memory_space<vmem>>, vector<1x2x32xf32>
    %136 = vector.shape_cast %135 : vector<1x2x32xf32> to vector<2x32xf32>
    %137 = vector.shape_cast %134 : vector<2x32xf32> to vector<1x2x32xf32>
    tpu.vector_store %arg9[%c2_76, %c0_77, %c0_78], %137 {strides = array<i32>} : memref<8x2x32xf32, #tpu.memory_space<vmem>>, vector<1x2x32xf32>,
    %138 = arith.truncf %134 : vector<2x32xf32> to vector<2x32xbf16>
    %cst_79 = arith.constant dense<0.000000e+00> : vector<2x128xf32>
    %139 = tpu.matmul %138, %1, %cst_79 {dimension_numbers = #tpu.dot_dimension_numbers<[1], [0], [0], [1], [0, 0, 1, 1], [], []>} : vector<2x32xbf16>, vector<32x128xbf16>, vector<2x128xf32> -> vector<2x128xf32>
    %c3_80 = arith.constant 3 : index
    %c0_81 = arith.constant 0 : index
    %c0_82 = arith.constant 0 : index
    %140 = vector.load %arg8[%c3_80, %c0_81, %c0_82] : memref<8x2x128xf32, #tpu.memory_space<vmem>>, vector<1x2x128xf32>
    %141 = vector.shape_cast %140 : vector<1x2x128xf32> to vector<2x128xf32>
    %142 = arith.addf %139, %141 : vector<2x128xf32>
    %143 = arith.negf %142 : vector<2x128xf32>
    %144 = math.exp %143 : vector<2x128xf32>
    %cst_83 = arith.constant 1.000000e+00 : f32
    %145 = vector.broadcast %cst_83 : f32 to vector<2x128xf32>
    %146 = arith.addf %145, %144 : vector<2x128xf32>
    %147 = arith.divf %145, %146 : vector<2x128xf32>
    %148 = math.tanh %142 : vector<2x128xf32>
    %149 = vector.extract_strided_slice %147 {offsets = [0, 0], sizes = [2, 32], strides = [1, 1]} : vector<2x128xf32> to vector<2x32xf32>
    %150 = vector.extract_strided_slice %147 {offsets = [0, 32], sizes = [2, 32], strides = [1, 1]} : vector<2x128xf32> to vector<2x32xf32>
    %151 = vector.extract_strided_slice %148 {offsets = [0, 64], sizes = [2, 32], strides = [1, 1]} : vector<2x128xf32> to vector<2x32xf32>
    %152 = vector.extract_strided_slice %147 {offsets = [0, 96], sizes = [2, 32], strides = [1, 1]} : vector<2x128xf32> to vector<2x32xf32>
    %153 = arith.mulf %150, %132 : vector<2x32xf32>
    %154 = arith.mulf %149, %151 : vector<2x32xf32>
    %155 = arith.addf %153, %154 : vector<2x32xf32>
    %156 = math.tanh %155 : vector<2x32xf32>
    %157 = arith.mulf %152, %156 : vector<2x32xf32>
    %c3_84 = arith.constant 3 : index
    %c0_85 = arith.constant 0 : index
    %c0_86 = arith.constant 0 : index
    %158 = vector.load %arg9[%c3_84, %c0_85, %c0_86] : memref<8x2x32xf32, #tpu.memory_space<vmem>>, vector<1x2x32xf32>
    %159 = vector.shape_cast %158 : vector<1x2x32xf32> to vector<2x32xf32>
    %160 = vector.shape_cast %157 : vector<2x32xf32> to vector<1x2x32xf32>
    tpu.vector_store %arg9[%c3_84, %c0_85, %c0_86], %160 {strides = array<i32>} : memref<8x2x32xf32, #tpu.memory_space<vmem>>, vector<1x2x32xf32>,
    %161 = arith.truncf %157 : vector<2x32xf32> to vector<2x32xbf16>
    %cst_87 = arith.constant dense<0.000000e+00> : vector<2x128xf32>
    %162 = tpu.matmul %161, %1, %cst_87 {dimension_numbers = #tpu.dot_dimension_numbers<[1], [0], [0], [1], [0, 0, 1, 1], [], []>} : vector<2x32xbf16>, vector<32x128xbf16>, vector<2x128xf32> -> vector<2x128xf32>
    %c4_88 = arith.constant 4 : index
    %c0_89 = arith.constant 0 : index
    %c0_90 = arith.constant 0 : index
    %163 = vector.load %arg8[%c4_88, %c0_89, %c0_90] : memref<8x2x128xf32, #tpu.memory_space<vmem>>, vector<1x2x128xf32>
    %164 = vector.shape_cast %163 : vector<1x2x128xf32> to vector<2x128xf32>
    %165 = arith.addf %162, %164 : vector<2x128xf32>
    %166 = arith.negf %165 : vector<2x128xf32>
    %167 = math.exp %166 : vector<2x128xf32>
    %cst_91 = arith.constant 1.000000e+00 : f32
    %168 = vector.broadcast %cst_91 : f32 to vector<2x128xf32>
    %169 = arith.addf %168, %167 : vector<2x128xf32>
    %170 = arith.divf %168, %169 : vector<2x128xf32>
    %171 = math.tanh %165 : vector<2x128xf32>
    %172 = vector.extract_strided_slice %170 {offsets = [0, 0], sizes = [2, 32], strides = [1, 1]} : vector<2x128xf32> to vector<2x32xf32>
    %173 = vector.extract_strided_slice %170 {offsets = [0, 32], sizes = [2, 32], strides = [1, 1]} : vector<2x128xf32> to vector<2x32xf32>
    %174 = vector.extract_strided_slice %171 {offsets = [0, 64], sizes = [2, 32], strides = [1, 1]} : vector<2x128xf32> to vector<2x32xf32>
    %175 = vector.extract_strided_slice %170 {offsets = [0, 96], sizes = [2, 32], strides = [1, 1]} : vector<2x128xf32> to vector<2x32xf32>
    %176 = arith.mulf %173, %155 : vector<2x32xf32>
    %177 = arith.mulf %172, %174 : vector<2x32xf32>
    %178 = arith.addf %176, %177 : vector<2x32xf32>
    %179 = math.tanh %178 : vector<2x32xf32>
    %180 = arith.mulf %175, %179 : vector<2x32xf32>
    %c4_92 = arith.constant 4 : index
    %c0_93 = arith.constant 0 : index
    %c0_94 = arith.constant 0 : index
    %181 = vector.load %arg9[%c4_92, %c0_93, %c0_94] : memref<8x2x32xf32, #tpu.memory_space<vmem>>, vector<1x2x32xf32>
    %182 = vector.shape_cast %181 : vector<1x2x32xf32> to vector<2x32xf32>
    %183 = vector.shape_cast %180 : vector<2x32xf32> to vector<1x2x32xf32>
    tpu.vector_store %arg9[%c4_92, %c0_93, %c0_94], %183 {strides = array<i32>} : memref<8x2x32xf32, #tpu.memory_space<vmem>>, vector<1x2x32xf32>,
    %184 = arith.truncf %180 : vector<2x32xf32> to vector<2x32xbf16>
    %cst_95 = arith.constant dense<0.000000e+00> : vector<2x128xf32>
    %185 = tpu.matmul %184, %1, %cst_95 {dimension_numbers = #tpu.dot_dimension_numbers<[1], [0], [0], [1], [0, 0, 1, 1], [], []>} : vector<2x32xbf16>, vector<32x128xbf16>, vector<2x128xf32> -> vector<2x128xf32>
    %c5_96 = arith.constant 5 : index
    %c0_97 = arith.constant 0 : index
    %c0_98 = arith.constant 0 : index
    %186 = vector.load %arg8[%c5_96, %c0_97, %c0_98] : memref<8x2x128xf32, #tpu.memory_space<vmem>>, vector<1x2x128xf32>
    %187 = vector.shape_cast %186 : vector<1x2x128xf32> to vector<2x128xf32>
    %188 = arith.addf %185, %187 : vector<2x128xf32>
    %189 = arith.negf %188 : vector<2x128xf32>
    %190 = math.exp %189 : vector<2x128xf32>
    %cst_99 = arith.constant 1.000000e+00 : f32
    %191 = vector.broadcast %cst_99 : f32 to vector<2x128xf32>
    %192 = arith.addf %191, %190 : vector<2x128xf32>
    %193 = arith.divf %191, %192 : vector<2x128xf32>
    %194 = math.tanh %188 : vector<2x128xf32>
    %195 = vector.extract_strided_slice %193 {offsets = [0, 0], sizes = [2, 32], strides = [1, 1]} : vector<2x128xf32> to vector<2x32xf32>
    %196 = vector.extract_strided_slice %193 {offsets = [0, 32], sizes = [2, 32], strides = [1, 1]} : vector<2x128xf32> to vector<2x32xf32>
    %197 = vector.extract_strided_slice %194 {offsets = [0, 64], sizes = [2, 32], strides = [1, 1]} : vector<2x128xf32> to vector<2x32xf32>
    %198 = vector.extract_strided_slice %193 {offsets = [0, 96], sizes = [2, 32], strides = [1, 1]} : vector<2x128xf32> to vector<2x32xf32>
    %199 = arith.mulf %196, %178 : vector<2x32xf32>
    %200 = arith.mulf %195, %197 : vector<2x32xf32>
    %201 = arith.addf %199, %200 : vector<2x32xf32>
    %202 = math.tanh %201 : vector<2x32xf32>
    %203 = arith.mulf %198, %202 : vector<2x32xf32>
    %c5_100 = arith.constant 5 : index
    %c0_101 = arith.constant 0 : index
    %c0_102 = arith.constant 0 : index
    %204 = vector.load %arg9[%c5_100, %c0_101, %c0_102] : memref<8x2x32xf32, #tpu.memory_space<vmem>>, vector<1x2x32xf32>
    %205 = vector.shape_cast %204 : vector<1x2x32xf32> to vector<2x32xf32>
    %206 = vector.shape_cast %203 : vector<2x32xf32> to vector<1x2x32xf32>
    tpu.vector_store %arg9[%c5_100, %c0_101, %c0_102], %206 {strides = array<i32>} : memref<8x2x32xf32, #tpu.memory_space<vmem>>, vector<1x2x32xf32>,
    %207 = arith.truncf %203 : vector<2x32xf32> to vector<2x32xbf16>
    %cst_103 = arith.constant dense<0.000000e+00> : vector<2x128xf32>
    %208 = tpu.matmul %207, %1, %cst_103 {dimension_numbers = #tpu.dot_dimension_numbers<[1], [0], [0], [1], [0, 0, 1, 1], [], []>} : vector<2x32xbf16>, vector<32x128xbf16>, vector<2x128xf32> -> vector<2x128xf32>
    %c6_104 = arith.constant 6 : index
    %c0_105 = arith.constant 0 : index
    %c0_106 = arith.constant 0 : index
    %209 = vector.load %arg8[%c6_104, %c0_105, %c0_106] : memref<8x2x128xf32, #tpu.memory_space<vmem>>, vector<1x2x128xf32>
    %210 = vector.shape_cast %209 : vector<1x2x128xf32> to vector<2x128xf32>
    %211 = arith.addf %208, %210 : vector<2x128xf32>
    %212 = arith.negf %211 : vector<2x128xf32>
    %213 = math.exp %212 : vector<2x128xf32>
    %cst_107 = arith.constant 1.000000e+00 : f32
    %214 = vector.broadcast %cst_107 : f32 to vector<2x128xf32>
    %215 = arith.addf %214, %213 : vector<2x128xf32>
    %216 = arith.divf %214, %215 : vector<2x128xf32>
    %217 = math.tanh %211 : vector<2x128xf32>
    %218 = vector.extract_strided_slice %216 {offsets = [0, 0], sizes = [2, 32], strides = [1, 1]} : vector<2x128xf32> to vector<2x32xf32>
    %219 = vector.extract_strided_slice %216 {offsets = [0, 32], sizes = [2, 32], strides = [1, 1]} : vector<2x128xf32> to vector<2x32xf32>
    %220 = vector.extract_strided_slice %217 {offsets = [0, 64], sizes = [2, 32], strides = [1, 1]} : vector<2x128xf32> to vector<2x32xf32>
    %221 = vector.extract_strided_slice %216 {offsets = [0, 96], sizes = [2, 32], strides = [1, 1]} : vector<2x128xf32> to vector<2x32xf32>
    %222 = arith.mulf %219, %201 : vector<2x32xf32>
    %223 = arith.mulf %218, %220 : vector<2x32xf32>
    %224 = arith.addf %222, %223 : vector<2x32xf32>
    %225 = math.tanh %224 : vector<2x32xf32>
    %226 = arith.mulf %221, %225 : vector<2x32xf32>
    %c6_108 = arith.constant 6 : index
    %c0_109 = arith.constant 0 : index
    %c0_110 = arith.constant 0 : index
    %227 = vector.load %arg9[%c6_108, %c0_109, %c0_110] : memref<8x2x32xf32, #tpu.memory_space<vmem>>, vector<1x2x32xf32>
    %228 = vector.shape_cast %227 : vector<1x2x32xf32> to vector<2x32xf32>
    %229 = vector.shape_cast %226 : vector<2x32xf32> to vector<1x2x32xf32>
    tpu.vector_store %arg9[%c6_108, %c0_109, %c0_110], %229 {strides = array<i32>} : memref<8x2x32xf32, #tpu.memory_space<vmem>>, vector<1x2x32xf32>,
    %230 = arith.truncf %226 : vector<2x32xf32> to vector<2x32xbf16>
    %cst_111 = arith.constant dense<0.000000e+00> : vector<2x128xf32>
    %231 = tpu.matmul %230, %1, %cst_111 {dimension_numbers = #tpu.dot_dimension_numbers<[1], [0], [0], [1], [0, 0, 1, 1], [], []>} : vector<2x32xbf16>, vector<32x128xbf16>, vector<2x128xf32> -> vector<2x128xf32>
    %c7_112 = arith.constant 7 : index
    %c0_113 = arith.constant 0 : index
    %c0_114 = arith.constant 0 : index
    %232 = vector.load %arg8[%c7_112, %c0_113, %c0_114] : memref<8x2x128xf32, #tpu.memory_space<vmem>>, vector<1x2x128xf32>
    %233 = vector.shape_cast %232 : vector<1x2x128xf32> to vector<2x128xf32>
    %234 = arith.addf %231, %233 : vector<2x128xf32>
    %235 = arith.negf %234 : vector<2x128xf32>
    %236 = math.exp %235 : vector<2x128xf32>
    %cst_115 = arith.constant 1.000000e+00 : f32
    %237 = vector.broadcast %cst_115 : f32 to vector<2x128xf32>
    %238 = arith.addf %237, %236 : vector<2x128xf32>
    %239 = arith.divf %237, %238 : vector<2x128xf32>
    %240 = math.tanh %234 : vector<2x128xf32>
    %241 = vector.extract_strided_slice %239 {offsets = [0, 0], sizes = [2, 32], strides = [1, 1]} : vector<2x128xf32> to vector<2x32xf32>
    %242 = vector.extract_strided_slice %239 {offsets = [0, 32], sizes = [2, 32], strides = [1, 1]} : vector<2x128xf32> to vector<2x32xf32>
    %243 = vector.extract_strided_slice %240 {offsets = [0, 64], sizes = [2, 32], strides = [1, 1]} : vector<2x128xf32> to vector<2x32xf32>
    %244 = vector.extract_strided_slice %239 {offsets = [0, 96], sizes = [2, 32], strides = [1, 1]} : vector<2x128xf32> to vector<2x32xf32>
    %245 = arith.mulf %242, %224 : vector<2x32xf32>
    %246 = arith.mulf %241, %243 : vector<2x32xf32>
    %247 = arith.addf %245, %246 : vector<2x32xf32>
    %248 = math.tanh %247 : vector<2x32xf32>
    %249 = arith.mulf %244, %248 : vector<2x32xf32>
    %c7_116 = arith.constant 7 : index
    %c0_117 = arith.constant 0 : index
    %c0_118 = arith.constant 0 : index
    %250 = vector.load %arg9[%c7_116, %c0_117, %c0_118] : memref<8x2x32xf32, #tpu.memory_space<vmem>>, vector<1x2x32xf32>
    %251 = vector.shape_cast %250 : vector<1x2x32xf32> to vector<2x32xf32>
    %252 = vector.shape_cast %249 : vector<2x32xf32> to vector<1x2x32xf32>
    tpu.vector_store %arg9[%c7_116, %c0_117, %c0_118], %252 {strides = array<i32>} : memref<8x2x32xf32, #tpu.memory_space<vmem>>, vector<1x2x32xf32>,
    %c0_119 = arith.constant 0 : index
    %c0_120 = arith.constant 0 : index
    %253 = vector.load %arg4[%c0_119, %c0_120] : memref<32x128xf32, #tpu.memory_space<vmem>>, vector<32x128xf32>
    %c0_121 = arith.constant 0 : index
    %c0_122 = arith.constant 0 : index
    %254 = vector.load %arg5[%c0_121, %c0_122] : memref<32x128xbf16, #tpu.memory_space<vmem>>, vector<32x128xbf16>
    %c0_123 = arith.constant 0 : index
    %c0_124 = arith.constant 0 : index
    %255 = vector.load %arg6[%c0_123, %c0_124] : memref<1x128xf32, #tpu.memory_space<vmem>>, vector<1x128xf32>
    %c0_125 = arith.constant 0 : index
    %c0_126 = arith.constant 0 : index
    %c0_127 = arith.constant 0 : index
    %256 = vector.load %arg9[%c0_125, %c0_126, %c0_127] : memref<8x2x32xf32, #tpu.memory_space<vmem>>, vector<1x2x32xf32>
    %257 = vector.shape_cast %256 : vector<1x2x32xf32> to vector<2x32xf32>
    %cst_128 = arith.constant dense<0.000000e+00> : vector<2x128xf32>
    %258 = tpu.matmul %257, %253, %cst_128 {dimension_numbers = #tpu.dot_dimension_numbers<[1], [0], [0], [1], [0, 0, 1, 1], [], []>} : vector<2x32xf32>, vector<32x128xf32>, vector<2x128xf32> -> vector<2x128xf32>
    %259 = vector.broadcast %255 : vector<1x128xf32> to vector<2x128xf32>
    %260 = arith.addf %258, %259 : vector<2x128xf32>
    %c0_129 = arith.constant 0 : index
    %c0_130 = arith.constant 0 : index
    %c0_131 = arith.constant 0 : index
    %261 = vector.load %arg8[%c0_129, %c0_130, %c0_131] : memref<8x2x128xf32, #tpu.memory_space<vmem>>, vector<1x2x128xf32>
    %262 = vector.shape_cast %261 : vector<1x2x128xf32> to vector<2x128xf32>
    %263 = vector.shape_cast %260 : vector<2x128xf32> to vector<1x2x128xf32>
    tpu.vector_store %arg8[%c0_129, %c0_130, %c0_131], %263 {strides = array<i32>} : memref<8x2x128xf32, #tpu.memory_space<vmem>>, vector<1x2x128xf32>,
    %c1_132 = arith.constant 1 : index
    %c0_133 = arith.constant 0 : index
    %c0_134 = arith.constant 0 : index
    %264 = vector.load %arg9[%c1_132, %c0_133, %c0_134] : memref<8x2x32xf32, #tpu.memory_space<vmem>>, vector<1x2x32xf32>
    %265 = vector.shape_cast %264 : vector<1x2x32xf32> to vector<2x32xf32>
    %cst_135 = arith.constant dense<0.000000e+00> : vector<2x128xf32>
    %266 = tpu.matmul %265, %253, %cst_135 {dimension_numbers = #tpu.dot_dimension_numbers<[1], [0], [0], [1], [0, 0, 1, 1], [], []>} : vector<2x32xf32>, vector<32x128xf32>, vector<2x128xf32> -> vector<2x128xf32>
    %267 = vector.broadcast %255 : vector<1x128xf32> to vector<2x128xf32>
    %268 = arith.addf %266, %267 : vector<2x128xf32>
    %c1_136 = arith.constant 1 : index
    %c0_137 = arith.constant 0 : index
    %c0_138 = arith.constant 0 : index
    %269 = vector.load %arg8[%c1_136, %c0_137, %c0_138] : memref<8x2x128xf32, #tpu.memory_space<vmem>>, vector<1x2x128xf32>
    %270 = vector.shape_cast %269 : vector<1x2x128xf32> to vector<2x128xf32>
    %271 = vector.shape_cast %268 : vector<2x128xf32> to vector<1x2x128xf32>
    tpu.vector_store %arg8[%c1_136, %c0_137, %c0_138], %271 {strides = array<i32>} : memref<8x2x128xf32, #tpu.memory_space<vmem>>, vector<1x2x128xf32>,
    %c2_139 = arith.constant 2 : index
    %c0_140 = arith.constant 0 : index
    %c0_141 = arith.constant 0 : index
    %272 = vector.load %arg9[%c2_139, %c0_140, %c0_141] : memref<8x2x32xf32, #tpu.memory_space<vmem>>, vector<1x2x32xf32>
    %273 = vector.shape_cast %272 : vector<1x2x32xf32> to vector<2x32xf32>
    %cst_142 = arith.constant dense<0.000000e+00> : vector<2x128xf32>
    %274 = tpu.matmul %273, %253, %cst_142 {dimension_numbers = #tpu.dot_dimension_numbers<[1], [0], [0], [1], [0, 0, 1, 1], [], []>} : vector<2x32xf32>, vector<32x128xf32>, vector<2x128xf32> -> vector<2x128xf32>
    %275 = vector.broadcast %255 : vector<1x128xf32> to vector<2x128xf32>
    %276 = arith.addf %274, %275 : vector<2x128xf32>
    %c2_143 = arith.constant 2 : index
    %c0_144 = arith.constant 0 : index
    %c0_145 = arith.constant 0 : index
    %277 = vector.load %arg8[%c2_143, %c0_144, %c0_145] : memref<8x2x128xf32, #tpu.memory_space<vmem>>, vector<1x2x128xf32>
    %278 = vector.shape_cast %277 : vector<1x2x128xf32> to vector<2x128xf32>
    %279 = vector.shape_cast %276 : vector<2x128xf32> to vector<1x2x128xf32>
    tpu.vector_store %arg8[%c2_143, %c0_144, %c0_145], %279 {strides = array<i32>} : memref<8x2x128xf32, #tpu.memory_space<vmem>>, vector<1x2x128xf32>,
    %c3_146 = arith.constant 3 : index
    %c0_147 = arith.constant 0 : index
    %c0_148 = arith.constant 0 : index
    %280 = vector.load %arg9[%c3_146, %c0_147, %c0_148] : memref<8x2x32xf32, #tpu.memory_space<vmem>>, vector<1x2x32xf32>
    %281 = vector.shape_cast %280 : vector<1x2x32xf32> to vector<2x32xf32>
    %cst_149 = arith.constant dense<0.000000e+00> : vector<2x128xf32>
    %282 = tpu.matmul %281, %253, %cst_149 {dimension_numbers = #tpu.dot_dimension_numbers<[1], [0], [0], [1], [0, 0, 1, 1], [], []>} : vector<2x32xf32>, vector<32x128xf32>, vector<2x128xf32> -> vector<2x128xf32>
    %283 = vector.broadcast %255 : vector<1x128xf32> to vector<2x128xf32>
    %284 = arith.addf %282, %283 : vector<2x128xf32>
    %c3_150 = arith.constant 3 : index
    %c0_151 = arith.constant 0 : index
    %c0_152 = arith.constant 0 : index
    %285 = vector.load %arg8[%c3_150, %c0_151, %c0_152] : memref<8x2x128xf32, #tpu.memory_space<vmem>>, vector<1x2x128xf32>
    %286 = vector.shape_cast %285 : vector<1x2x128xf32> to vector<2x128xf32>
    %287 = vector.shape_cast %284 : vector<2x128xf32> to vector<1x2x128xf32>
    tpu.vector_store %arg8[%c3_150, %c0_151, %c0_152], %287 {strides = array<i32>} : memref<8x2x128xf32, #tpu.memory_space<vmem>>, vector<1x2x128xf32>,
    %c4_153 = arith.constant 4 : index
    %c0_154 = arith.constant 0 : index
    %c0_155 = arith.constant 0 : index
    %288 = vector.load %arg9[%c4_153, %c0_154, %c0_155] : memref<8x2x32xf32, #tpu.memory_space<vmem>>, vector<1x2x32xf32>
    %289 = vector.shape_cast %288 : vector<1x2x32xf32> to vector<2x32xf32>
    %cst_156 = arith.constant dense<0.000000e+00> : vector<2x128xf32>
    %290 = tpu.matmul %289, %253, %cst_156 {dimension_numbers = #tpu.dot_dimension_numbers<[1], [0], [0], [1], [0, 0, 1, 1], [], []>} : vector<2x32xf32>, vector<32x128xf32>, vector<2x128xf32> -> vector<2x128xf32>
    %291 = vector.broadcast %255 : vector<1x128xf32> to vector<2x128xf32>
    %292 = arith.addf %290, %291 : vector<2x128xf32>
    %c4_157 = arith.constant 4 : index
    %c0_158 = arith.constant 0 : index
    %c0_159 = arith.constant 0 : index
    %293 = vector.load %arg8[%c4_157, %c0_158, %c0_159] : memref<8x2x128xf32, #tpu.memory_space<vmem>>, vector<1x2x128xf32>
    %294 = vector.shape_cast %293 : vector<1x2x128xf32> to vector<2x128xf32>
    %295 = vector.shape_cast %292 : vector<2x128xf32> to vector<1x2x128xf32>
    tpu.vector_store %arg8[%c4_157, %c0_158, %c0_159], %295 {strides = array<i32>} : memref<8x2x128xf32, #tpu.memory_space<vmem>>, vector<1x2x128xf32>,
    %c5_160 = arith.constant 5 : index
    %c0_161 = arith.constant 0 : index
    %c0_162 = arith.constant 0 : index
    %296 = vector.load %arg9[%c5_160, %c0_161, %c0_162] : memref<8x2x32xf32, #tpu.memory_space<vmem>>, vector<1x2x32xf32>
    %297 = vector.shape_cast %296 : vector<1x2x32xf32> to vector<2x32xf32>
    %cst_163 = arith.constant dense<0.000000e+00> : vector<2x128xf32>
    %298 = tpu.matmul %297, %253, %cst_163 {dimension_numbers = #tpu.dot_dimension_numbers<[1], [0], [0], [1], [0, 0, 1, 1], [], []>} : vector<2x32xf32>, vector<32x128xf32>, vector<2x128xf32> -> vector<2x128xf32>
    %299 = vector.broadcast %255 : vector<1x128xf32> to vector<2x128xf32>
    %300 = arith.addf %298, %299 : vector<2x128xf32>
    %c5_164 = arith.constant 5 : index
    %c0_165 = arith.constant 0 : index
    %c0_166 = arith.constant 0 : index
    %301 = vector.load %arg8[%c5_164, %c0_165, %c0_166] : memref<8x2x128xf32, #tpu.memory_space<vmem>>, vector<1x2x128xf32>
    %302 = vector.shape_cast %301 : vector<1x2x128xf32> to vector<2x128xf32>
    %303 = vector.shape_cast %300 : vector<2x128xf32> to vector<1x2x128xf32>
    tpu.vector_store %arg8[%c5_164, %c0_165, %c0_166], %303 {strides = array<i32>} : memref<8x2x128xf32, #tpu.memory_space<vmem>>, vector<1x2x128xf32>,
    %c6_167 = arith.constant 6 : index
    %c0_168 = arith.constant 0 : index
    %c0_169 = arith.constant 0 : index
    %304 = vector.load %arg9[%c6_167, %c0_168, %c0_169] : memref<8x2x32xf32, #tpu.memory_space<vmem>>, vector<1x2x32xf32>
    %305 = vector.shape_cast %304 : vector<1x2x32xf32> to vector<2x32xf32>
    %cst_170 = arith.constant dense<0.000000e+00> : vector<2x128xf32>
    %306 = tpu.matmul %305, %253, %cst_170 {dimension_numbers = #tpu.dot_dimension_numbers<[1], [0], [0], [1], [0, 0, 1, 1], [], []>} : vector<2x32xf32>, vector<32x128xf32>, vector<2x128xf32> -> vector<2x128xf32>
    %307 = vector.broadcast %255 : vector<1x128xf32> to vector<2x128xf32>
    %308 = arith.addf %306, %307 : vector<2x128xf32>
    %c6_171 = arith.constant 6 : index
    %c0_172 = arith.constant 0 : index
    %c0_173 = arith.constant 0 : index
    %309 = vector.load %arg8[%c6_171, %c0_172, %c0_173] : memref<8x2x128xf32, #tpu.memory_space<vmem>>, vector<1x2x128xf32>
    %310 = vector.shape_cast %309 : vector<1x2x128xf32> to vector<2x128xf32>
    %311 = vector.shape_cast %308 : vector<2x128xf32> to vector<1x2x128xf32>
    tpu.vector_store %arg8[%c6_171, %c0_172, %c0_173], %311 {strides = array<i32>} : memref<8x2x128xf32, #tpu.memory_space<vmem>>, vector<1x2x128xf32>,
    %c7_174 = arith.constant 7 : index
    %c0_175 = arith.constant 0 : index
    %c0_176 = arith.constant 0 : index
    %312 = vector.load %arg9[%c7_174, %c0_175, %c0_176] : memref<8x2x32xf32, #tpu.memory_space<vmem>>, vector<1x2x32xf32>
    %313 = vector.shape_cast %312 : vector<1x2x32xf32> to vector<2x32xf32>
    %cst_177 = arith.constant dense<0.000000e+00> : vector<2x128xf32>
    %314 = tpu.matmul %313, %253, %cst_177 {dimension_numbers = #tpu.dot_dimension_numbers<[1], [0], [0], [1], [0, 0, 1, 1], [], []>} : vector<2x32xf32>, vector<32x128xf32>, vector<2x128xf32> -> vector<2x128xf32>
    %315 = vector.broadcast %255 : vector<1x128xf32> to vector<2x128xf32>
    %316 = arith.addf %314, %315 : vector<2x128xf32>
    %c7_178 = arith.constant 7 : index
    %c0_179 = arith.constant 0 : index
    %c0_180 = arith.constant 0 : index
    %317 = vector.load %arg8[%c7_178, %c0_179, %c0_180] : memref<8x2x128xf32, #tpu.memory_space<vmem>>, vector<1x2x128xf32>
    %318 = vector.shape_cast %317 : vector<1x2x128xf32> to vector<2x128xf32>
    %319 = vector.shape_cast %316 : vector<2x128xf32> to vector<1x2x128xf32>
    tpu.vector_store %arg8[%c7_178, %c0_179, %c0_180], %319 {strides = array<i32>} : memref<8x2x128xf32, #tpu.memory_space<vmem>>, vector<1x2x128xf32>,
    %cst_181 = arith.constant 0.000000e+00 : f32
    %320 = vector.broadcast %cst_181 : f32 to vector<2x32xf32>
    %cst_182 = arith.constant 0.000000e+00 : f32
    %321 = vector.broadcast %cst_182 : f32 to vector<2x32xf32>
    %322 = arith.truncf %320 : vector<2x32xf32> to vector<2x32xbf16>
    %cst_183 = arith.constant dense<0.000000e+00> : vector<2x128xf32>
    %323 = tpu.matmul %322, %254, %cst_183 {dimension_numbers = #tpu.dot_dimension_numbers<[1], [0], [0], [1], [0, 0, 1, 1], [], []>} : vector<2x32xbf16>, vector<32x128xbf16>, vector<2x128xf32> -> vector<2x128xf32>
    %c0_184 = arith.constant 0 : index
    %c0_185 = arith.constant 0 : index
    %c0_186 = arith.constant 0 : index
    %324 = vector.load %arg8[%c0_184, %c0_185, %c0_186] : memref<8x2x128xf32, #tpu.memory_space<vmem>>, vector<1x2x128xf32>
    %325 = vector.shape_cast %324 : vector<1x2x128xf32> to vector<2x128xf32>
    %326 = arith.addf %323, %325 : vector<2x128xf32>
    %327 = arith.negf %326 : vector<2x128xf32>
    %328 = math.exp %327 : vector<2x128xf32>
    %cst_187 = arith.constant 1.000000e+00 : f32
    %329 = vector.broadcast %cst_187 : f32 to vector<2x128xf32>
    %330 = arith.addf %329, %328 : vector<2x128xf32>
    %331 = arith.divf %329, %330 : vector<2x128xf32>
    %332 = math.tanh %326 : vector<2x128xf32>
    %333 = vector.extract_strided_slice %331 {offsets = [0, 0], sizes = [2, 32], strides = [1, 1]} : vector<2x128xf32> to vector<2x32xf32>
    %334 = vector.extract_strided_slice %331 {offsets = [0, 32], sizes = [2, 32], strides = [1, 1]} : vector<2x128xf32> to vector<2x32xf32>
    %335 = vector.extract_strided_slice %332 {offsets = [0, 64], sizes = [2, 32], strides = [1, 1]} : vector<2x128xf32> to vector<2x32xf32>
    %336 = vector.extract_strided_slice %331 {offsets = [0, 96], sizes = [2, 32], strides = [1, 1]} : vector<2x128xf32> to vector<2x32xf32>
    %337 = arith.mulf %334, %321 : vector<2x32xf32>
    %338 = arith.mulf %333, %335 : vector<2x32xf32>
    %339 = arith.addf %337, %338 : vector<2x32xf32>
    %340 = math.tanh %339 : vector<2x32xf32>
    %341 = arith.mulf %336, %340 : vector<2x32xf32>
    %342 = arith.truncf %341 : vector<2x32xf32> to vector<2x32xbf16>
    %cst_188 = arith.constant dense<0.000000e+00> : vector<2x128xf32>
    %343 = tpu.matmul %342, %254, %cst_188 {dimension_numbers = #tpu.dot_dimension_numbers<[1], [0], [0], [1], [0, 0, 1, 1], [], []>} : vector<2x32xbf16>, vector<32x128xbf16>, vector<2x128xf32> -> vector<2x128xf32>
    %c1_189 = arith.constant 1 : index
    %c0_190 = arith.constant 0 : index
    %c0_191 = arith.constant 0 : index
    %344 = vector.load %arg8[%c1_189, %c0_190, %c0_191] : memref<8x2x128xf32, #tpu.memory_space<vmem>>, vector<1x2x128xf32>
    %345 = vector.shape_cast %344 : vector<1x2x128xf32> to vector<2x128xf32>
    %346 = arith.addf %343, %345 : vector<2x128xf32>
    %347 = arith.negf %346 : vector<2x128xf32>
    %348 = math.exp %347 : vector<2x128xf32>
    %cst_192 = arith.constant 1.000000e+00 : f32
    %349 = vector.broadcast %cst_192 : f32 to vector<2x128xf32>
    %350 = arith.addf %349, %348 : vector<2x128xf32>
    %351 = arith.divf %349, %350 : vector<2x128xf32>
    %352 = math.tanh %346 : vector<2x128xf32>
    %353 = vector.extract_strided_slice %351 {offsets = [0, 0], sizes = [2, 32], strides = [1, 1]} : vector<2x128xf32> to vector<2x32xf32>
    %354 = vector.extract_strided_slice %351 {offsets = [0, 32], sizes = [2, 32], strides = [1, 1]} : vector<2x128xf32> to vector<2x32xf32>
    %355 = vector.extract_strided_slice %352 {offsets = [0, 64], sizes = [2, 32], strides = [1, 1]} : vector<2x128xf32> to vector<2x32xf32>
    %356 = vector.extract_strided_slice %351 {offsets = [0, 96], sizes = [2, 32], strides = [1, 1]} : vector<2x128xf32> to vector<2x32xf32>
    %357 = arith.mulf %354, %339 : vector<2x32xf32>
    %358 = arith.mulf %353, %355 : vector<2x32xf32>
    %359 = arith.addf %357, %358 : vector<2x32xf32>
    %360 = math.tanh %359 : vector<2x32xf32>
    %361 = arith.mulf %356, %360 : vector<2x32xf32>
    %362 = arith.truncf %361 : vector<2x32xf32> to vector<2x32xbf16>
    %cst_193 = arith.constant dense<0.000000e+00> : vector<2x128xf32>
    %363 = tpu.matmul %362, %254, %cst_193 {dimension_numbers = #tpu.dot_dimension_numbers<[1], [0], [0], [1], [0, 0, 1, 1], [], []>} : vector<2x32xbf16>, vector<32x128xbf16>, vector<2x128xf32> -> vector<2x128xf32>
    %c2_194 = arith.constant 2 : index
    %c0_195 = arith.constant 0 : index
    %c0_196 = arith.constant 0 : index
    %364 = vector.load %arg8[%c2_194, %c0_195, %c0_196] : memref<8x2x128xf32, #tpu.memory_space<vmem>>, vector<1x2x128xf32>
    %365 = vector.shape_cast %364 : vector<1x2x128xf32> to vector<2x128xf32>
    %366 = arith.addf %363, %365 : vector<2x128xf32>
    %367 = arith.negf %366 : vector<2x128xf32>
    %368 = math.exp %367 : vector<2x128xf32>
    %cst_197 = arith.constant 1.000000e+00 : f32
    %369 = vector.broadcast %cst_197 : f32 to vector<2x128xf32>
    %370 = arith.addf %369, %368 : vector<2x128xf32>
    %371 = arith.divf %369, %370 : vector<2x128xf32>
    %372 = math.tanh %366 : vector<2x128xf32>
    %373 = vector.extract_strided_slice %371 {offsets = [0, 0], sizes = [2, 32], strides = [1, 1]} : vector<2x128xf32> to vector<2x32xf32>
    %374 = vector.extract_strided_slice %371 {offsets = [0, 32], sizes = [2, 32], strides = [1, 1]} : vector<2x128xf32> to vector<2x32xf32>
    %375 = vector.extract_strided_slice %372 {offsets = [0, 64], sizes = [2, 32], strides = [1, 1]} : vector<2x128xf32> to vector<2x32xf32>
    %376 = vector.extract_strided_slice %371 {offsets = [0, 96], sizes = [2, 32], strides = [1, 1]} : vector<2x128xf32> to vector<2x32xf32>
    %377 = arith.mulf %374, %359 : vector<2x32xf32>
    %378 = arith.mulf %373, %375 : vector<2x32xf32>
    %379 = arith.addf %377, %378 : vector<2x32xf32>
    %380 = math.tanh %379 : vector<2x32xf32>
    %381 = arith.mulf %376, %380 : vector<2x32xf32>
    %382 = arith.truncf %381 : vector<2x32xf32> to vector<2x32xbf16>
    %cst_198 = arith.constant dense<0.000000e+00> : vector<2x128xf32>
    %383 = tpu.matmul %382, %254, %cst_198 {dimension_numbers = #tpu.dot_dimension_numbers<[1], [0], [0], [1], [0, 0, 1, 1], [], []>} : vector<2x32xbf16>, vector<32x128xbf16>, vector<2x128xf32> -> vector<2x128xf32>
    %c3_199 = arith.constant 3 : index
    %c0_200 = arith.constant 0 : index
    %c0_201 = arith.constant 0 : index
    %384 = vector.load %arg8[%c3_199, %c0_200, %c0_201] : memref<8x2x128xf32, #tpu.memory_space<vmem>>, vector<1x2x128xf32>
    %385 = vector.shape_cast %384 : vector<1x2x128xf32> to vector<2x128xf32>
    %386 = arith.addf %383, %385 : vector<2x128xf32>
    %387 = arith.negf %386 : vector<2x128xf32>
    %388 = math.exp %387 : vector<2x128xf32>
    %cst_202 = arith.constant 1.000000e+00 : f32
    %389 = vector.broadcast %cst_202 : f32 to vector<2x128xf32>
    %390 = arith.addf %389, %388 : vector<2x128xf32>
    %391 = arith.divf %389, %390 : vector<2x128xf32>
    %392 = math.tanh %386 : vector<2x128xf32>
    %393 = vector.extract_strided_slice %391 {offsets = [0, 0], sizes = [2, 32], strides = [1, 1]} : vector<2x128xf32> to vector<2x32xf32>
    %394 = vector.extract_strided_slice %391 {offsets = [0, 32], sizes = [2, 32], strides = [1, 1]} : vector<2x128xf32> to vector<2x32xf32>
    %395 = vector.extract_strided_slice %392 {offsets = [0, 64], sizes = [2, 32], strides = [1, 1]} : vector<2x128xf32> to vector<2x32xf32>
    %396 = vector.extract_strided_slice %391 {offsets = [0, 96], sizes = [2, 32], strides = [1, 1]} : vector<2x128xf32> to vector<2x32xf32>
    %397 = arith.mulf %394, %379 : vector<2x32xf32>
    %398 = arith.mulf %393, %395 : vector<2x32xf32>
    %399 = arith.addf %397, %398 : vector<2x32xf32>
    %400 = math.tanh %399 : vector<2x32xf32>
    %401 = arith.mulf %396, %400 : vector<2x32xf32>
    %402 = arith.truncf %401 : vector<2x32xf32> to vector<2x32xbf16>
    %cst_203 = arith.constant dense<0.000000e+00> : vector<2x128xf32>
    %403 = tpu.matmul %402, %254, %cst_203 {dimension_numbers = #tpu.dot_dimension_numbers<[1], [0], [0], [1], [0, 0, 1, 1], [], []>} : vector<2x32xbf16>, vector<32x128xbf16>, vector<2x128xf32> -> vector<2x128xf32>
    %c4_204 = arith.constant 4 : index
    %c0_205 = arith.constant 0 : index
    %c0_206 = arith.constant 0 : index
    %404 = vector.load %arg8[%c4_204, %c0_205, %c0_206] : memref<8x2x128xf32, #tpu.memory_space<vmem>>, vector<1x2x128xf32>
    %405 = vector.shape_cast %404 : vector<1x2x128xf32> to vector<2x128xf32>
    %406 = arith.addf %403, %405 : vector<2x128xf32>
    %407 = arith.negf %406 : vector<2x128xf32>
    %408 = math.exp %407 : vector<2x128xf32>
    %cst_207 = arith.constant 1.000000e+00 : f32
    %409 = vector.broadcast %cst_207 : f32 to vector<2x128xf32>
    %410 = arith.addf %409, %408 : vector<2x128xf32>
    %411 = arith.divf %409, %410 : vector<2x128xf32>
    %412 = math.tanh %406 : vector<2x128xf32>
    %413 = vector.extract_strided_slice %411 {offsets = [0, 0], sizes = [2, 32], strides = [1, 1]} : vector<2x128xf32> to vector<2x32xf32>
    %414 = vector.extract_strided_slice %411 {offsets = [0, 32], sizes = [2, 32], strides = [1, 1]} : vector<2x128xf32> to vector<2x32xf32>
    %415 = vector.extract_strided_slice %412 {offsets = [0, 64], sizes = [2, 32], strides = [1, 1]} : vector<2x128xf32> to vector<2x32xf32>
    %416 = vector.extract_strided_slice %411 {offsets = [0, 96], sizes = [2, 32], strides = [1, 1]} : vector<2x128xf32> to vector<2x32xf32>
    %417 = arith.mulf %414, %399 : vector<2x32xf32>
    %418 = arith.mulf %413, %415 : vector<2x32xf32>
    %419 = arith.addf %417, %418 : vector<2x32xf32>
    %420 = math.tanh %419 : vector<2x32xf32>
    %421 = arith.mulf %416, %420 : vector<2x32xf32>
    %422 = arith.truncf %421 : vector<2x32xf32> to vector<2x32xbf16>
    %cst_208 = arith.constant dense<0.000000e+00> : vector<2x128xf32>
    %423 = tpu.matmul %422, %254, %cst_208 {dimension_numbers = #tpu.dot_dimension_numbers<[1], [0], [0], [1], [0, 0, 1, 1], [], []>} : vector<2x32xbf16>, vector<32x128xbf16>, vector<2x128xf32> -> vector<2x128xf32>
    %c5_209 = arith.constant 5 : index
    %c0_210 = arith.constant 0 : index
    %c0_211 = arith.constant 0 : index
    %424 = vector.load %arg8[%c5_209, %c0_210, %c0_211] : memref<8x2x128xf32, #tpu.memory_space<vmem>>, vector<1x2x128xf32>
    %425 = vector.shape_cast %424 : vector<1x2x128xf32> to vector<2x128xf32>
    %426 = arith.addf %423, %425 : vector<2x128xf32>
    %427 = arith.negf %426 : vector<2x128xf32>
    %428 = math.exp %427 : vector<2x128xf32>
    %cst_212 = arith.constant 1.000000e+00 : f32
    %429 = vector.broadcast %cst_212 : f32 to vector<2x128xf32>
    %430 = arith.addf %429, %428 : vector<2x128xf32>
    %431 = arith.divf %429, %430 : vector<2x128xf32>
    %432 = math.tanh %426 : vector<2x128xf32>
    %433 = vector.extract_strided_slice %431 {offsets = [0, 0], sizes = [2, 32], strides = [1, 1]} : vector<2x128xf32> to vector<2x32xf32>
    %434 = vector.extract_strided_slice %431 {offsets = [0, 32], sizes = [2, 32], strides = [1, 1]} : vector<2x128xf32> to vector<2x32xf32>
    %435 = vector.extract_strided_slice %432 {offsets = [0, 64], sizes = [2, 32], strides = [1, 1]} : vector<2x128xf32> to vector<2x32xf32>
    %436 = vector.extract_strided_slice %431 {offsets = [0, 96], sizes = [2, 32], strides = [1, 1]} : vector<2x128xf32> to vector<2x32xf32>
    %437 = arith.mulf %434, %419 : vector<2x32xf32>
    %438 = arith.mulf %433, %435 : vector<2x32xf32>
    %439 = arith.addf %437, %438 : vector<2x32xf32>
    %440 = math.tanh %439 : vector<2x32xf32>
    %441 = arith.mulf %436, %440 : vector<2x32xf32>
    %442 = arith.truncf %441 : vector<2x32xf32> to vector<2x32xbf16>
    %cst_213 = arith.constant dense<0.000000e+00> : vector<2x128xf32>
    %443 = tpu.matmul %442, %254, %cst_213 {dimension_numbers = #tpu.dot_dimension_numbers<[1], [0], [0], [1], [0, 0, 1, 1], [], []>} : vector<2x32xbf16>, vector<32x128xbf16>, vector<2x128xf32> -> vector<2x128xf32>
    %c6_214 = arith.constant 6 : index
    %c0_215 = arith.constant 0 : index
    %c0_216 = arith.constant 0 : index
    %444 = vector.load %arg8[%c6_214, %c0_215, %c0_216] : memref<8x2x128xf32, #tpu.memory_space<vmem>>, vector<1x2x128xf32>
    %445 = vector.shape_cast %444 : vector<1x2x128xf32> to vector<2x128xf32>
    %446 = arith.addf %443, %445 : vector<2x128xf32>
    %447 = arith.negf %446 : vector<2x128xf32>
    %448 = math.exp %447 : vector<2x128xf32>
    %cst_217 = arith.constant 1.000000e+00 : f32
    %449 = vector.broadcast %cst_217 : f32 to vector<2x128xf32>
    %450 = arith.addf %449, %448 : vector<2x128xf32>
    %451 = arith.divf %449, %450 : vector<2x128xf32>
    %452 = math.tanh %446 : vector<2x128xf32>
    %453 = vector.extract_strided_slice %451 {offsets = [0, 0], sizes = [2, 32], strides = [1, 1]} : vector<2x128xf32> to vector<2x32xf32>
    %454 = vector.extract_strided_slice %451 {offsets = [0, 32], sizes = [2, 32], strides = [1, 1]} : vector<2x128xf32> to vector<2x32xf32>
    %455 = vector.extract_strided_slice %452 {offsets = [0, 64], sizes = [2, 32], strides = [1, 1]} : vector<2x128xf32> to vector<2x32xf32>
    %456 = vector.extract_strided_slice %451 {offsets = [0, 96], sizes = [2, 32], strides = [1, 1]} : vector<2x128xf32> to vector<2x32xf32>
    %457 = arith.mulf %454, %439 : vector<2x32xf32>
    %458 = arith.mulf %453, %455 : vector<2x32xf32>
    %459 = arith.addf %457, %458 : vector<2x32xf32>
    %460 = math.tanh %459 : vector<2x32xf32>
    %461 = arith.mulf %456, %460 : vector<2x32xf32>
    %462 = arith.truncf %461 : vector<2x32xf32> to vector<2x32xbf16>
    %cst_218 = arith.constant dense<0.000000e+00> : vector<2x128xf32>
    %463 = tpu.matmul %462, %254, %cst_218 {dimension_numbers = #tpu.dot_dimension_numbers<[1], [0], [0], [1], [0, 0, 1, 1], [], []>} : vector<2x32xbf16>, vector<32x128xbf16>, vector<2x128xf32> -> vector<2x128xf32>
    %c7_219 = arith.constant 7 : index
    %c0_220 = arith.constant 0 : index
    %c0_221 = arith.constant 0 : index
    %464 = vector.load %arg8[%c7_219, %c0_220, %c0_221] : memref<8x2x128xf32, #tpu.memory_space<vmem>>, vector<1x2x128xf32>
    %465 = vector.shape_cast %464 : vector<1x2x128xf32> to vector<2x128xf32>
    %466 = arith.addf %463, %465 : vector<2x128xf32>
    %467 = arith.negf %466 : vector<2x128xf32>
    %468 = math.exp %467 : vector<2x128xf32>
    %cst_222 = arith.constant 1.000000e+00 : f32
    %469 = vector.broadcast %cst_222 : f32 to vector<2x128xf32>
    %470 = arith.addf %469, %468 : vector<2x128xf32>
    %471 = arith.divf %469, %470 : vector<2x128xf32>
    %472 = math.tanh %466 : vector<2x128xf32>
    %473 = vector.extract_strided_slice %471 {offsets = [0, 0], sizes = [2, 32], strides = [1, 1]} : vector<2x128xf32> to vector<2x32xf32>
    %474 = vector.extract_strided_slice %471 {offsets = [0, 32], sizes = [2, 32], strides = [1, 1]} : vector<2x128xf32> to vector<2x32xf32>
    %475 = vector.extract_strided_slice %472 {offsets = [0, 64], sizes = [2, 32], strides = [1, 1]} : vector<2x128xf32> to vector<2x32xf32>
    %476 = vector.extract_strided_slice %471 {offsets = [0, 96], sizes = [2, 32], strides = [1, 1]} : vector<2x128xf32> to vector<2x32xf32>
    %477 = arith.mulf %474, %459 : vector<2x32xf32>
    %478 = arith.mulf %473, %475 : vector<2x32xf32>
    %479 = arith.addf %477, %478 : vector<2x32xf32>
    %480 = math.tanh %479 : vector<2x32xf32>
    %481 = arith.mulf %476, %480 : vector<2x32xf32>
    %c0_223 = arith.constant 0 : index
    %c0_224 = arith.constant 0 : index
    %482 = vector.load %arg7[%c0_223, %c0_224] : memref<2x32xf32, #tpu.memory_space<vmem>>, vector<2x32xf32>
    tpu.vector_store %arg7[%c0_223, %c0_224], %481 {strides = array<i32>} : memref<2x32xf32, #tpu.memory_space<vmem>>, vector<2x32xf32>,
    return
  }
}

</mosaic_0001>

<bundles_post_ra>
// kernel: lstm_embedding_forward.1
= control target key start
LH: loop header
LB: loop body
LE: loop exit
PB: predicated region body
PF: predicated region fallthrough
CT: control target
= control target key end

     0   :  { %v3107_v1 = vmov 0.0   ;;  %vm3108_vm0 = vmmov 0   ;;  %vm42_vm1 = vcmask 130048   ;;  %s3634_s0 = inlined_call_operand.vmem [shape: f32[8,2,16], index: 0, kind: input, shape index: {}]   ;;  %s3635_s1 = inlined_call_operand.vmem [shape: f32[16,128], index: 1, kind: input, shape index: {}]   ;;  %s3636_s2 = inlined_call_operand.vmem [shape: bf16[32,128], index: 2, kind: input, shape index: {}]   ;;  %s3637_s3 = inlined_call_operand.vmem [shape: f32[1,128], index: 3, kind: input, shape index: {}]   ;;  %s3638_s4 = inlined_call_operand.vmem [shape: f32[32,128], index: 4, kind: input, shape index: {}]   ;;  %s3639_s5 = inlined_call_operand.vmem [shape: bf16[32,128], index: 5, kind: input, shape index: {}]   ;;  %s3640_s6 = inlined_call_operand.vmem [shape: f32[1,128], index: 6, kind: input, shape index: {}]   ;;  %s3641_s7 = inlined_call_operand.hbm [shape: f32[2,32], index: 7, kind: output, shape index: {}]  }
   0x1   :  { %v3156_v0 = vld [vmem:[%s3635_s1 + $0x8] sm:$0xff]  ;;  %2675 = vmatprep.subr.mxu0 %v3107_v1  ;;  %v3162_v2 = vld [vmem:[%s3635_s1] sm:$0xff]  ;;  %2679 = vmatprep.mubr.msk.f32.mxu0 %vm3108_vm0, %v3107_v1 }
   0x2   :  { %v35_v3 = vld [vmem:[%s3634_s0] sm:$0x3]  ;;  %2676 = vmatpush3.msra.mxu0 %v3156_v0  ;;  %2682 = vmatprep.subr.mxu1 %v3107_v1 }
   0x3   :  { %2677 = vmatprep.subr.mxu0 %v3107_v1  ;;  %2683 = vmatpush3.msra.mxu1 %v3156_v0 }
   0x4   :  { %2678 = vmatpush3.msra.mxu0 %v3162_v2  ;;  %2684 = vmatprep.subr.mxu1 %v3107_v1 }
   0x5   :  { %2680 = vmatmul.mubr.msk.f32.vlgmr.msra.gmra.mxu0 %vm42_vm1, %v35_v3  ;;  %2689 = vmatprep.subr.mxu0 %v3107_v1 }
   0x6   :  { %12 = vsyncpa [#allocation5], 0  ;;  %2690 = vmatpush3.msra.mxu0 %v3156_v0  ;;  %2693 = vmatprep.mubr.msk.f32.mxu0 %vm3108_vm0, %v3107_v1  ;;  %v2508_v4 = vld [vmem:[%s3634_s0 + $0x4] sm:$0x3]  ;;  %v2512_v5 = vld [vmem:[%s3634_s0 + $0x8] sm:$0x3] }
   0x7   :  { %2691 = vmatprep.subr.mxu0 %v3107_v1  ;;  %2685 = vmatpush3.msra.mxu1 %v3162_v2  ;;  %v2516_v6 = vld [vmem:[%s3634_s0 + $0xc] sm:$0x3]  ;;  %v3220_v8 = vld [vmem:[%s3636_s2] sm:$0xff]   ;;  %v3109_v9 = vmov 0   ;;  %s3111_s17 = smov 32   ;;  %vm669_vm2 = vcmask 261120  }
   0x8   :  { %2692 = vmatpush3.msra.mxu0 %v3162_v2  ;;  %2686 = vmatprep.mubr.msk.f32.mxu1 %vm3108_vm0, %v3107_v1  ;;  %v3210_v7 = vld [vmem:[%s3636_s2 + $0x8] sm:$0xff]   ;;  %v3237_v10 = vld [vmem:[%s3637_s3] ss:$0 sm:$0xff]  ;;  %s3110_s3 = smov 64   ;;  %v2506_v39 = vld [vmem:[%s3634_s0 + $0x2] sm:$0x3] }
   0x9   :  { %2694 = vmatmul.mubr.msk.f32.vlgmr.msra.gmra.mxu0 %vm42_vm1, %v2508_v4  ;;  %2703 = vmatprep.subr.mxu0 %v3107_v1  ;;  %v2510_v40 = vld [vmem:[%s3634_s0 + $0x6] sm:$0x3]  ;;  %v2514_v41 = vld [vmem:[%s3634_s0 + $0xa] sm:$0x3]  ;;  %v2518_v43 = vld [vmem:[%s3634_s0 + $0xe] sm:$0x3] }
   0xa   :  { %2704 = vmatpush3.msra.mxu0 %v3156_v0  ;;  %2707 = vmatprep.mubr.msk.f32.mxu0 %vm3108_vm0, %v3107_v1  ;;  %vm741_vm3 = vcmask 254976  }
   0xb   :  { %2705 = vmatprep.subr.mxu0 %v3107_v1  ;;  %2696 = vmatprep.subr.mxu1 %v3107_v1 }
   0xc   :  { %2706 = vmatpush3.msra.mxu0 %v3162_v2  ;;  %2687 = vmatmul.mubr.msk.f32.vlgmr.msra.gmra.mxu1 %vm42_vm1, %v2506_v39 }
   0xd   :  { %2708 = vmatmul.mubr.msk.f32.vlgmr.msra.gmra.mxu0 %vm42_vm1, %v2512_v5  ;;  %2717 = vmatprep.subr.mxu0 %v3107_v1 }
   0xe   :  { %2718 = vmatpush3.msra.mxu0 %v3156_v0  ;;  %2721 = vmatprep.mubr.msk.f32.mxu0 %vm3108_vm0, %v3107_v1 }
   0xf   :  { %2719 = vmatprep.subr.mxu0 %v3107_v1  ;;  %2697 = vmatpush3.msra.mxu1 %v3156_v0 }
  0x10   :  { %2720 = vmatpush3.msra.mxu0 %v3162_v2  ;;  %2700 = vmatprep.mubr.msk.f32.mxu1 %vm3108_vm0, %v3107_v1 }
  0x11   :  { %2722 = vmatmul.mubr.msk.f32.vlgmr.msra.gmra.mxu0 %vm42_vm1, %v2516_v6  ;;  %2731 = vmatprep.subr.bf16.mxu0 %v3107_v1 }
  0x12   :  { %2732 = vmatpush3.bf16.msra.mxu0 %v3210_v7  ;;  %2735 = vmatprep.mubr.msk.bf16.mxu0 %vm3108_vm0, %v3107_v1 }
  0x13   :  { %2733 = vmatprep.subr.bf16.mxu0 %v3107_v1  ;;  %2698 = vmatprep.subr.mxu1 %v3107_v1 }
  0x14   :  { %2699 = vmatpush3.msra.mxu1 %v3162_v2 }
  0x15   :  { %2701 = vmatmul.mubr.msk.f32.vlgmr.msra.gmra.mxu1 %vm42_vm1, %v2510_v40  ;;  %2710 = vmatprep.subr.mxu1 %v3107_v1 }
  0x16   :  { %2734 = vmatpush3.bf16.msra.mxu0 %v3220_v8  ;;  %2711 = vmatpush3.msra.mxu1 %v3156_v0 }
  0x17   :  { %2747 = vmatprep.subr.bf16.mxu0 %v3107_v1  ;;  %2714 = vmatprep.mubr.msk.f32.mxu1 %vm3108_vm0, %v3107_v1 }
  0x18   :  { %2712 = vmatprep.subr.mxu1 %v3107_v1 }
  0x19   :  { %2736 = vmatmul.mubr.bf16.vlgmr.msra.gmra.mxu0 %v3109_v9  ;;  %2713 = vmatpush3.msra.mxu1 %v3162_v2 }
  0x1a   :  { %2748 = vmatpush3.bf16.msra.mxu0 %v3210_v7  ;;  %2751 = vmatprep.mubr.msk.bf16.mxu0 %vm3108_vm0, %v3107_v1 }
  0x1b   :  { %2749 = vmatprep.subr.bf16.mxu0 %v3107_v1  ;;  %2715 = vmatmul.mubr.msk.f32.vlgmr.msra.gmra.mxu1 %vm42_vm1, %v2514_v41 }
  0x1c   :  { %2724 = vmatprep.subr.mxu1 %v3107_v1  ;;  %2728 = vmatprep.mubr.msk.f32.mxu1 %vm3108_vm0, %v3107_v1 }
  0x1d   :  { %2725 = vmatpush3.msra.mxu1 %v3156_v0 }
  0x1e   :  { %2750 = vmatpush3.bf16.msra.mxu0 %v3220_v8  ;;  %2726 = vmatprep.subr.mxu1 %v3107_v1 }
  0x1f   :  { %2763 = vmatprep.subr.bf16.mxu0 %v3107_v1  ;;  %2727 = vmatpush3.msra.mxu1 %v3162_v2 }
  0x20   :  { %2729 = vmatmul.mubr.msk.f32.vlgmr.msra.gmra.mxu1 %vm42_vm1, %v2518_v43  ;;  %2739 = vmatprep.subr.bf16.mxu1 %v3107_v1 }
  0x21   :  { %2740 = vmatpush3.bf16.msra.mxu1 %v3210_v7  ;;  %2743 = vmatprep.mubr.msk.bf16.mxu1 %vm3108_vm0, %v3107_v1 }
  0x22   :  { %2741 = vmatprep.subr.bf16.mxu1 %v3107_v1 }
  0x25   :  { %2742 = vmatpush3.bf16.msra.mxu1 %v3220_v8 }
  0x26   :  { %2755 = vmatprep.subr.bf16.mxu1 %v3107_v1 }
  0xc5   :  { %v112_v11 = vpop.f32.mrf.mxu0 }
  0xc6   :  { %v113_v12 = vadd.f32 %v3237_v10, %v112_v11 }
  0xc7   :  { %v2681_v13 = vpop.f32.mrf.mxu0 }
  0xc8   :  { %116 = vst [vmem:[#allocation2] sm:$0x3] %v113_v12 }
  0xc9   :  { %v265_v14 = vpop.f32.mrf.mxu0 }
  0xca   :  { %v266_v15 = vadd.f32 %v3237_v10, %v265_v14 }
  0xcb   :  { %v2695_v16 = vpop.f32.mrf.mxu0 }
  0xcc   :  { %270 = vst [vmem:[#allocation2 + $0x4] sm:$0x3] %v266_v15  ;;  %v188_v47 = vpop.f32.mrf.mxu1 }
  0xcd   :  { %v419_v17 = vpop.f32.mrf.mxu0  ;;  %v189_v48 = vadd.f32 %v3237_v10, %v188_v47 }
  0xce   :  { %v420_v18 = vadd.f32 %v3237_v10, %v419_v17  ;;  %v2688_v49 = vpop.f32.mrf.mxu1 }
  0xcf   :  { %v2709_v19 = vpop.f32.mrf.mxu0  ;;  %v656_v23 = vld [vmem:[#allocation2] sm:$0x3]  ;;  %193 = vst [vmem:[#allocation2 + $0x2] sm:$0x3] %v189_v48 }
  0xd0   :  { %424 = vst [vmem:[#allocation2 + $0x8] sm:$0x3] %v420_v18 }
  0xd1   :  { %v573_v20 = vpop.f32.mrf.mxu0 }
  0xd2   :  { %v574_v21 = vadd.f32 %v3237_v10, %v573_v20 }
  0xd3   :  { %v2723_v22 = vpop.f32.mrf.mxu0 }
  0xd4   :  { %578 = vst [vmem:[#allocation2 + $0xc] sm:$0x3] %v574_v21  ;;  %v822_v21 = vld [vmem:[#allocation2 + $0x4] sm:$0x3] }
  0xd5   :  { %v342_v50 = vpop.f32.mrf.mxu1 }
  0xd6   :  { %v343_v51 = vadd.f32 %v3237_v10, %v342_v50  ;;  %v744_v60 = vld [vmem:[#allocation2 + $0x2] sm:$0x3] }
  0xd7   :  { %v2702_v52 = vpop.f32.mrf.mxu1 }
  0xd8   :  { %347 = vst [vmem:[#allocation2 + $0x6] sm:$0x3] %v343_v51 }
  0xd9   :  { %v707_v24 = vpop.f32.mrf.mxu0 }
  0xda   :  { %v708_v25 = vadd.f32 %v707_v24, %v656_v23 }
  0xdb   :  { %v2737_v26 = vpop.f32.mrf.mxu0  ;;  %v496_v53 = vpop.f32.mrf.mxu1 }
  0xdc   :  { %2957 = vtanh.f32 %v708_v25  ;;  %v2522_v30 = vmul.f32 -1.442695, %v708_v25  ;;  %v497_v54 = vadd.f32 %v3237_v10, %v496_v53 }
  0xdd   :  { %v710_v27 = vpop.f32.mrf.mxu0  ;;  %v2716_v55 = vpop.f32.mrf.mxu1 }
  0xde   :  { %2959 = vpow2.f32 %v2522_v30  ;;  %501 = vst [vmem:[#allocation2 + $0xa] sm:$0x3] %v497_v54 }
  0xdf   :  { %v2738_v28 = vpop.f32.mrf.mxu0 }
  0xe0   :  { %v650_v56 = vpop.f32.mrf.mxu1 }
  0xe1   :  { %v651_v57 = vadd.f32 %v3237_v10, %v650_v56 }
  0xe2   :  { %v2730_v58 = vpop.f32.mrf.mxu1 }
  0xe3   :  { %655 = vst [vmem:[#allocation2 + $0xe] sm:$0x3] %v651_v57 }
  0xe9   :  { %v2958_v29 = vpop.eup %2957 }
  0xea   :  { %722 = vrot.lane.b32.xlu0 %v2958_v29, %s3110_s3 }
  0xeb   :  { %v2960_v31 = vpop.eup %2959 }
  0xec   :  { %v716_v32 = vadd.f32 1.0, %v2960_v31 }
  0xee   :  { %2961 = vrcp.f32 %v716_v32 }
  0xfb   :  { %v2962_v33 = vpop.eup %2961 }
  0xfc   :  { %v720_v36 = vmul.f32 0.0, %v2962_v33 }
 0x15c   :  { %v723_v34 = vpop.permute.xlu0 %722 }
 0x15d   :  { %v725_v35 = vmul.f32 %v2962_v33, %v723_v34 }
 0x15f   :  { %727 = vrot.lane.b32.xlu0 %v725_v35, %s3111_s17 }
 0x1d1   :  { %v728_v37 = vpop.permute.xlu0 %727 }
 0x1d2   :  { %v3245_v38 = vadd.f32 %v728_v37, %v720_v36 }
 0x1d4   :  { %2963 = vtanh.f32 %v3245_v38 }
 0x1e1   :  { %v2964_v42 = vpop.eup %2963 }
 0x1e2   :  { %733 = vrot.lane.b32.xlu1 %v2964_v42, %s3110_s3  ;;  %v900_v42 = vld [vmem:[#allocation2 + $0x6] sm:$0x3] }
 0x254   :  { %v734_v44 = vpop.permute.xlu1 %733 }
 0x255   :  { %v3289_v45 = vmul.f32 %v2962_v33, %v734_v44 }
 0x257   :  { %v743_v46 = vpack.c.bf16 %v3289_v45, %v3289_v45 }
 0x259   :  { %746 = vrot.lane.b32.xlu1 %v743_v46, %s3111_s17 }
 0x2cb   :  { %v747_v59 = vpop.permute.xlu1 %746 }
 0x2cc   :  { %2744 = vmatmul.mubr.msk.bf16.vlgmr.msra.gmra.mxu1 %vm669_vm2, %v747_v59 }
 0x2cd   :  { %2756 = vmatpush3.bf16.msra.mxu1 %v3210_v7  ;;  %2759 = vmatprep.mubr.msk.bf16.mxu1 %vm3108_vm0, %v3107_v1 }
 0x2ce   :  { %2757 = vmatprep.subr.bf16.mxu1 %v3107_v1 }
 0x2d1   :  { %2758 = vmatpush3.bf16.msra.mxu1 %v3220_v8 }
 0x2d2   :  { %2771 = vmatprep.subr.bf16.mxu1 %v3107_v1 }
 0x38c   :  { %v785_v61 = vpop.f32.mrf.mxu1 }
 0x38d   :  { %v786_v62 = vadd.f32 %v785_v61, %v744_v60 }
 0x38e   :  { %v2745_v63 = vpop.f32.mrf.mxu1 }
 0x38f   :  { %2965 = vtanh.f32 %v786_v62  ;;  %v2524_v4 = vmul.f32 -1.442695, %v786_v62 }
 0x390   :  { %v788_v0 = vpop.f32.mrf.mxu1 }
 0x391   :  { %2967 = vpow2.f32 %v2524_v4  ;;  %v978_v0 = vld [vmem:[#allocation2 + $0x8] sm:$0x3] }
 0x392   :  { %v2746_v2 = vpop.f32.mrf.mxu1 }
 0x39c   :  { %v2966_v3 = vpop.eup %2965 }
 0x39d   :  { %800 = vrot.lane.b32.xlu0 %v2966_v3, %s3110_s3 }
 0x39e   :  { %v2968_v5 = vpop.eup %2967 }
 0x39f   :  { %v794_v6 = vadd.f32 1.0, %v2968_v5 }
 0x3a1   :  { %2969 = vrcp.f32 %v794_v6 }
 0x3ae   :  { %v2970_v10 = vpop.eup %2969 }
 0x3af   :  { %v798_v13 = vmul.f32 %v2970_v10, %v3245_v38 }
 0x40f   :  { %v801_v11 = vpop.permute.xlu0 %800 }
 0x410   :  { %v803_v12 = vmul.f32 %v2970_v10, %v801_v11 }
 0x412   :  { %805 = vrot.lane.b32.xlu1 %v803_v12, %s3111_s17 }
 0x484   :  { %v806_v14 = vpop.permute.xlu1 %805 }
 0x485   :  { %v808_v15 = vadd.f32 %v806_v14, %v798_v13 }
 0x487   :  { %2971 = vtanh.f32 %v808_v15 }
 0x494   :  { %v2972_v16 = vpop.eup %2971 }
 0x495   :  { %811 = vrot.lane.b32.xlu0 %v2972_v16, %s3110_s3 }
 0x507   :  { %v812_v17 = vpop.permute.xlu0 %811 }
 0x508   :  { %v3309_v18 = vmul.f32 %v2970_v10, %v812_v17 }
 0x50a   :  { %v821_v19 = vpack.c.bf16 %v3309_v18, %v3309_v18 }
 0x50c   :  { %824 = vrot.lane.b32.xlu1 %v821_v19, %s3111_s17 }
 0x57e   :  { %v825_v20 = vpop.permute.xlu1 %824 }
 0x57f   :  { %2752 = vmatmul.mubr.msk.bf16.vlgmr.msra.gmra.mxu0 %vm669_vm2, %v825_v20 }
 0x580   :  { %2764 = vmatpush3.bf16.msra.mxu0 %v3210_v7  ;;  %2767 = vmatprep.mubr.msk.bf16.mxu0 %vm3108_vm0, %v3107_v1 }
 0x581   :  { %2765 = vmatprep.subr.bf16.mxu0 %v3107_v1 }
 0x584   :  { %2766 = vmatpush3.bf16.msra.mxu0 %v3220_v8 }
 0x585   :  { %2779 = vmatprep.subr.bf16.mxu0 %v3107_v1 }
 0x63f   :  { %v863_v22 = vpop.f32.mrf.mxu0 }
 0x640   :  { %v864_v23 = vadd.f32 %v863_v22, %v822_v21 }
 0x641   :  { %v2753_v24 = vpop.f32.mrf.mxu0 }
 0x642   :  { %2973 = vtanh.f32 %v864_v23  ;;  %v2526_v28 = vmul.f32 -1.442695, %v864_v23 }
 0x643   :  { %v866_v25 = vpop.f32.mrf.mxu0 }
 0x644   :  { %2975 = vpow2.f32 %v2526_v28 }
 0x645   :  { %v2754_v26 = vpop.f32.mrf.mxu0 }
 0x646   :  { %v1056_v26 = vld [vmem:[#allocation2 + $0xa] sm:$0x3] }
 0x64f   :  { %v2974_v27 = vpop.eup %2973 }
 0x650   :  { %878 = vrot.lane.b32.xlu0 %v2974_v27, %s3110_s3 }
 0x651   :  { %v2976_v29 = vpop.eup %2975 }
 0x652   :  { %v872_v30 = vadd.f32 1.0, %v2976_v29 }
 0x654   :  { %2977 = vrcp.f32 %v872_v30 }
 0x661   :  { %v2978_v31 = vpop.eup %2977 }
 0x662   :  { %v876_v34 = vmul.f32 %v2978_v31, %v808_v15 }
 0x6c2   :  { %v879_v32 = vpop.permute.xlu0 %878 }
 0x6c3   :  { %v881_v33 = vmul.f32 %v2978_v31, %v879_v32 }
 0x6c5   :  { %883 = vrot.lane.b32.xlu1 %v881_v33, %s3111_s17 }
 0x737   :  { %v884_v35 = vpop.permute.xlu1 %883 }
 0x738   :  { %v886_v36 = vadd.f32 %v884_v35, %v876_v34 }
 0x73a   :  { %2979 = vtanh.f32 %v886_v36 }
 0x747   :  { %v2980_v37 = vpop.eup %2979 }
 0x748   :  { %889 = vrot.lane.b32.xlu0 %v2980_v37, %s3110_s3 }
 0x7ba   :  { %v890_v38 = vpop.permute.xlu0 %889 }
 0x7bb   :  { %v3324_v39 = vmul.f32 %v2978_v31, %v890_v38 }
 0x7bd   :  { %v899_v40 = vpack.c.bf16 %v3324_v39, %v3324_v39 }
 0x7bf   :  { %902 = vrot.lane.b32.xlu1 %v899_v40, %s3111_s17 }
 0x831   :  { %v903_v41 = vpop.permute.xlu1 %902 }
 0x832   :  { %2760 = vmatmul.mubr.msk.bf16.vlgmr.msra.gmra.mxu1 %vm669_vm2, %v903_v41 }
 0x833   :  { %2772 = vmatpush3.bf16.msra.mxu1 %v3210_v7  ;;  %2775 = vmatprep.mubr.msk.bf16.mxu1 %vm3108_vm0, %v3107_v1 }
 0x834   :  { %2773 = vmatprep.subr.bf16.mxu1 %v3107_v1 }
 0x837   :  { %2774 = vmatpush3.bf16.msra.mxu1 %v3220_v8 }
 0x838   :  { %2787 = vmatprep.subr.bf16.mxu1 %v3107_v1 }
 0x8f2   :  { %v941_v43 = vpop.f32.mrf.mxu1 }
 0x8f3   :  { %v942_v44 = vadd.f32 %v941_v43, %v900_v42 }
 0x8f4   :  { %v2761_v46 = vpop.f32.mrf.mxu1 }
 0x8f5   :  { %2981 = vtanh.f32 %v942_v44  ;;  %v2528_v50 = vmul.f32 -1.442695, %v942_v44 }
 0x8f6   :  { %v944_v47 = vpop.f32.mrf.mxu1 }
 0x8f7   :  { %2983 = vpow2.f32 %v2528_v50  ;;  %v1134_v47 = vld [vmem:[#allocation2 + $0xc] sm:$0x3] }
 0x8f8   :  { %v2762_v48 = vpop.f32.mrf.mxu1 }
 0x902   :  { %v2982_v49 = vpop.eup %2981 }
 0x903   :  { %956 = vrot.lane.b32.xlu0 %v2982_v49, %s3110_s3 }
 0x904   :  { %v2984_v51 = vpop.eup %2983 }
 0x905   :  { %v950_v52 = vadd.f32 1.0, %v2984_v51 }
 0x907   :  { %2985 = vrcp.f32 %v950_v52 }
 0x914   :  { %v2986_v53 = vpop.eup %2985 }
 0x915   :  { %v954_v56 = vmul.f32 %v2986_v53, %v886_v36 }
 0x975   :  { %v957_v54 = vpop.permute.xlu0 %956 }
 0x976   :  { %v959_v55 = vmul.f32 %v2986_v53, %v957_v54 }
 0x978   :  { %961 = vrot.lane.b32.xlu1 %v959_v55, %s3111_s17 }
 0x9ea   :  { %v962_v57 = vpop.permute.xlu1 %961 }
 0x9eb   :  { %v964_v58 = vadd.f32 %v962_v57, %v954_v56  ;;  %v3381_v57 = vld [vmem:[%s3638_s4 + $0x18] sm:$0xff] }
 0x9ed   :  { %2987 = vtanh.f32 %v964_v58 }
 0x9fa   :  { %v2988_v59 = vpop.eup %2987 }
 0x9fb   :  { %967 = vrot.lane.b32.xlu0 %v2988_v59, %s3110_s3  ;;  %v3395_v59 = vld [vmem:[%s3638_s4 + $0x8] sm:$0xff] }
 0xa6d   :  { %v968_v60 = vpop.permute.xlu0 %967 }
 0xa6e   :  { %v3339_v61 = vmul.f32 %v2986_v53, %v968_v60  ;;  %v3400_v60 = vld [vmem:[%s3638_s4] sm:$0xff] }
 0xa70   :  { %v977_v62 = vpack.c.bf16 %v3339_v61, %v3339_v61 }
 0xa72   :  { %980 = vrot.lane.b32.xlu1 %v977_v62, %s3111_s17 }
 0xae4   :  { %v981_v63 = vpop.permute.xlu1 %980 }
 0xae5   :  { %2768 = vmatmul.mubr.msk.bf16.vlgmr.msra.gmra.mxu0 %vm669_vm2, %v981_v63 }
 0xae6   :  { %2780 = vmatpush3.bf16.msra.mxu0 %v3210_v7  ;;  %2783 = vmatprep.mubr.msk.bf16.mxu0 %vm3108_vm0, %v3107_v1 }
 0xae7   :  { %2781 = vmatprep.subr.bf16.mxu0 %v3107_v1 }
 0xaea   :  { %2782 = vmatpush3.bf16.msra.mxu0 %v3220_v8 }
 0xaeb   :  { %2795 = vmatprep.subr.mxu0 %v3107_v1 }
 0xba5   :  { %v1019_v2 = vpop.f32.mrf.mxu0 }
 0xba6   :  { %v1020_v3 = vadd.f32 %v1019_v2, %v978_v0 }
 0xba7   :  { %v2769_v4 = vpop.f32.mrf.mxu0 }
 0xba8   :  { %2989 = vtanh.f32 %v1020_v3  ;;  %v2530_v11 = vmul.f32 -1.442695, %v1020_v3 }
 0xba9   :  { %v1022_v5 = vpop.f32.mrf.mxu0 }
 0xbaa   :  { %2991 = vpow2.f32 %v2530_v11 }
 0xbab   :  { %v2770_v6 = vpop.f32.mrf.mxu0 }
 0xbb5   :  { %v2990_v10 = vpop.eup %2989 }
 0xbb6   :  { %1034 = vrot.lane.b32.xlu0 %v2990_v10, %s3110_s3 }
 0xbb7   :  { %v2992_v12 = vpop.eup %2991 }
 0xbb8   :  { %v1028_v13 = vadd.f32 1.0, %v2992_v12 }
 0xbba   :  { %2993 = vrcp.f32 %v1028_v13 }
 0xbc7   :  { %v2994_v14 = vpop.eup %2993 }
 0xbc8   :  { %v1032_v17 = vmul.f32 %v2994_v14, %v964_v58  ;;  %v3386_v58 = vld [vmem:[%s3638_s4 + $0x10] sm:$0xff] }
 0xc28   :  { %v1035_v15 = vpop.permute.xlu0 %1034 }
 0xc29   :  { %v1037_v16 = vmul.f32 %v2994_v14, %v1035_v15 }
 0xc2b   :  { %1039 = vrot.lane.b32.xlu1 %v1037_v16, %s3111_s17  ;;  %v3458_v16 = vld [vmem:[%s3640_s6] ss:$0 sm:$0xff] }
 0xc9d   :  { %v1040_v19 = vpop.permute.xlu1 %1039 }
 0xc9e   :  { %v1042_v20 = vadd.f32 %v1040_v19, %v1032_v17 }
 0xca0   :  { %2995 = vtanh.f32 %v1042_v20 }
 0xcad   :  { %v2996_v21 = vpop.eup %2995 }
 0xcae   :  { %1045 = vrot.lane.b32.xlu0 %v2996_v21, %s3110_s3 }
 0xd20   :  { %v1046_v22 = vpop.permute.xlu0 %1045 }
 0xd21   :  { %v3354_v23 = vmul.f32 %v2994_v14, %v1046_v22 }
 0xd23   :  { %v1055_v24 = vpack.c.bf16 %v3354_v23, %v3354_v23 }
 0xd25   :  { %1058 = vrot.lane.b32.xlu1 %v1055_v24, %s3111_s17 }
 0xd97   :  { %v1059_v25 = vpop.permute.xlu1 %1058 }
 0xd98   :  { %2776 = vmatmul.mubr.msk.bf16.vlgmr.msra.gmra.mxu1 %vm669_vm2, %v1059_v25  ;;  %v3481_v25 = vld [vmem:[%s3639_s5] sm:$0xff]  }
 0xd99   :  { %2788 = vmatpush3.bf16.msra.mxu1 %v3210_v7  ;;  %2791 = vmatprep.mubr.msk.bf16.mxu1 %vm3108_vm0, %v3107_v1 }
 0xd9a   :  { %2789 = vmatprep.subr.bf16.mxu1 %v3107_v1 }
 0xd9d   :  { %2790 = vmatpush3.bf16.msra.mxu1 %v3220_v8 }
 0xd9e   :  { %2806 = vmatprep.subr.mxu1 %v3107_v1 }
 0xe58   :  { %v1097_v27 = vpop.f32.mrf.mxu1 }
 0xe59   :  { %v1098_v28 = vadd.f32 %v1097_v27, %v1056_v26 }
 0xe5a   :  { %v2777_v29 = vpop.f32.mrf.mxu1 }
 0xe5b   :  { %2997 = vtanh.f32 %v1098_v28  ;;  %v2532_v7 = vmul.f32 -1.442695, %v1098_v28 }
 0xe5c   :  { %v1100_v30 = vpop.f32.mrf.mxu1 }
 0xe5d   :  { %2999 = vpow2.f32 %v2532_v7 }
 0xe5e   :  { %v2778_v31 = vpop.f32.mrf.mxu1 }
 0xe5f   :  { %v1212_v31 = vld [vmem:[#allocation2 + $0xe] sm:$0x3] }
 0xe68   :  { %v2998_v32 = vpop.eup %2997 }
 0xe69   :  { %1112 = vrot.lane.b32.xlu0 %v2998_v32, %s3110_s3 }
 0xe6a   :  { %v3000_v33 = vpop.eup %2999 }
 0xe6b   :  { %v1106_v34 = vadd.f32 1.0, %v3000_v33 }
 0xe6d   :  { %3001 = vrcp.f32 %v1106_v34 }
 0xe7a   :  { %v3002_v35 = vpop.eup %3001 }
 0xe7b   :  { %v1110_v37 = vmul.f32 %v3002_v35, %v1042_v20 }
 0xedb   :  { %v1113_v36 = vpop.permute.xlu0 %1112 }
 0xedc   :  { %v1115_v8 = vmul.f32 %v3002_v35, %v1113_v36 }
 0xede   :  { %1117 = vrot.lane.b32.xlu1 %v1115_v8, %s3111_s17 }
 0xf50   :  { %v1118_v38 = vpop.permute.xlu1 %1117 }
 0xf51   :  { %v1120_v40 = vadd.f32 %v1118_v38, %v1110_v37 }
 0xf53   :  { %3003 = vtanh.f32 %v1120_v40 }
 0xf60   :  { %v3004_v41 = vpop.eup %3003 }
 0xf61   :  { %1123 = vrot.lane.b32.xlu0 %v3004_v41, %s3110_s3 }
 0xfd3   :  { %v1124_v42 = vpop.permute.xlu0 %1123 }
 0xfd4   :  { %v3369_v43 = vmul.f32 %v3002_v35, %v1124_v42 }
 0xfd6   :  { %v1133_v44 = vpack.c.bf16 %v3369_v43, %v3369_v43 }
 0xfd8   :  { %1136 = vrot.lane.b32.xlu1 %v1133_v44, %s3111_s17 }
0x104a   :  { %v1137_v46 = vpop.permute.xlu1 %1136 }
0x104b   :  { %2784 = vmatmul.mubr.msk.bf16.vlgmr.msra.gmra.mxu0 %vm669_vm2, %v1137_v46 }
0x104c   :  { %2803 = vmatprep.mubr.msk.f32.mxu0 %vm3108_vm0, %v3107_v1  ;;  %2796 = vmatpush3.msra.mxu0 %v3381_v57 }
0x104d   :  { %2797 = vmatprep.subr.mxu0 %v3107_v1 }
0x104e   :  { %2798 = vmatpush3.msra.mxu0 %v3386_v58 }
0x104f   :  { %2799 = vmatprep.subr.mxu0 %v3107_v1 }
0x1050   :  { %2800 = vmatpush3.msra.mxu0 %v3395_v59 }
0x1051   :  { %2801 = vmatprep.subr.mxu0 %v3107_v1 }
0x1052   :  { %2802 = vmatpush3.msra.mxu0 %v3400_v60 }
0x1053   :  { %2817 = vmatprep.subr.mxu0 %v3107_v1 }
0x110b   :  { %v1175_v48 = vpop.f32.mrf.mxu0 }
0x110c   :  { %v1176_v49 = vadd.f32 %v1175_v48, %v1134_v47 }
0x110d   :  { %v2785_v50 = vpop.f32.mrf.mxu0 }
0x110e   :  { %3005 = vtanh.f32 %v1176_v49  ;;  %v2534_v54 = vmul.f32 -1.442695, %v1176_v49 }
0x110f   :  { %v1178_v51 = vpop.f32.mrf.mxu0 }
0x1110   :  { %3007 = vpow2.f32 %v2534_v54 }
0x1111   :  { %v2786_v52 = vpop.f32.mrf.mxu0 }
0x111b   :  { %v3006_v53 = vpop.eup %3005 }
0x111c   :  { %1190 = vrot.lane.b32.xlu0 %v3006_v53, %s3110_s3 }
0x111d   :  { %v3008_v55 = vpop.eup %3007 }
0x111e   :  { %v1184_v56 = vadd.f32 1.0, %v3008_v55 }
0x1120   :  { %3009 = vrcp.f32 %v1184_v56 }
0x112d   :  { %v3010_v62 = vpop.eup %3009 }
0x112e   :  { %v1188_v2 = vmul.f32 %v3010_v62, %v1120_v40 }
0x118e   :  { %v1191_v63 = vpop.permute.xlu0 %1190 }
0x118f   :  { %v1193_v0 = vmul.f32 %v3010_v62, %v1191_v63 }
0x1191   :  { %1195 = vrot.lane.b32.xlu1 %v1193_v0, %s3111_s17 }
0x1195   :  { %738 = vrot.lane.b32.xlu1 %v3289_v45, %s3111_s17 }
0x1199   :  { %1050 = vrot.lane.b32.xlu1 %v3354_v23, %s3111_s17  ;;  %v3470_v23 = vld [vmem:[%s3639_s5 + $0x8] sm:$0xff]   ;;  %s3112_s5 = smov [#allocation4]  }
0x119a   :  { %s2496_s13 = sshll.u32 %s3112_s5, 4  ;;  %s2497_s13 = int_to_ptr.vmem [resolvable:$true] %s2496_s13 }
0x119b   :  { %s3085_s14 = scalar_lea.vmem %s2497_s13, 32  ;;  %p3090_p1 = scmp.lt.s32.totalorder %s2497_s13, %s2497_s13 }
0x119c   :  { %p3086_p0 = scmp.ne.s32.totalorder %s2497_s13, %s3085_s14  ;;  %p3091_p2 = scmp.lt.s32.totalorder %s3085_s14, %s3085_s14 }
0x119e   :  { %p3092_p3 = por %p3091_p2, %p3090_p1 }
0x11a0   :  { %p3093_p4 = pnand %p3092_p3, %p3086_p0 }
0x1203   :  { %v1196_v3 = vpop.permute.xlu1 %1195 }
0x1204   :  { %v3411_v4 = vadd.f32 %v1196_v3, %v1188_v2 }
0x1206   :  { %3011 = vtanh.f32 %v3411_v4 }
0x1207   :  { %v739_v5 = vpop.permute.xlu1 %738 }
0x1208   :  { %742 = vst.msk [vmem:[#allocation3] sm:$0x3] %vm741_vm3, %v739_v5 }
0x120b   :  { %v1051_v6 = vpop.permute.xlu1 %1050 }
0x120c   :  { %1054 = vst.msk [vmem:[#allocation3 + $0x8] sm:$0x3] %vm741_vm3, %v1051_v6 }
0x120f   :  { %v1298_v10 = vld [vmem:[#allocation3] sm:$0x3] }
0x1210   :  { %2804 = vmatmul.mubr.msk.f32.vlgmr.msra.gmra.mxu0 %vm669_vm2, %v1298_v10 }
0x1211   :  { %2818 = vmatpush3.msra.mxu0 %v3381_v57  ;;  %2825 = vmatprep.mubr.msk.f32.mxu0 %vm3108_vm0, %v3107_v1 }
0x1212   :  { %2819 = vmatprep.subr.mxu0 %v3107_v1 }
0x1213   :  { %v3012_v45 = vpop.eup %3011  ;;  %2820 = vmatpush3.msra.mxu0 %v3386_v58 }
0x1214   :  { %1201 = vrot.lane.b32.xlu0 %v3012_v45, %s3110_s3  ;;  %2821 = vmatprep.subr.mxu0 %v3107_v1 }
0x1215   :  { %2822 = vmatpush3.msra.mxu0 %v3395_v59 }
0x1216   :  { %2823 = vmatprep.subr.mxu0 %v3107_v1 }
0x1217   :  { %2824 = vmatpush3.msra.mxu0 %v3400_v60 }
0x1218   :  { %894 = vrot.lane.b32.xlu0 %v3324_v39, %s3111_s17  ;;  %2839 = vmatprep.subr.mxu0 %v3107_v1  ;;  %v1604_v39 = vld [vmem:[#allocation3 + $0x8] sm:$0x3] }
0x1286   :  { %v1202_v11 = vpop.permute.xlu0 %1201 }
0x1287   :  { %v1204_v12 = vmul.f32 %v3010_v62, %v1202_v11 }
0x1289   :  { %v1211_v13 = vpack.c.bf16 %v1204_v12, %v1204_v12  ;;  %1206 = vrot.lane.b32.xlu0 %v1204_v12, %s3111_s17 }
0x128a   :  { %v895_v14 = vpop.permute.xlu0 %894 }
0x128b   :  { %898 = vst.msk [vmem:[#allocation3 + $0x4] sm:$0x3] %vm741_vm3, %v895_v14  ;;  %1214 = vrot.lane.b32.xlu1 %v1211_v13, %s3111_s17 }
0x1292   :  { %v1454_v15 = vld [vmem:[#allocation3 + $0x4] sm:$0x3] }
0x1293   :  { %2826 = vmatmul.mubr.msk.f32.vlgmr.msra.gmra.mxu0 %vm669_vm2, %v1454_v15 }
0x1294   :  { %2840 = vmatpush3.msra.mxu0 %v3381_v57  ;;  %2847 = vmatprep.mubr.msk.f32.mxu0 %vm3108_vm0, %v3107_v1 }
0x1295   :  { %2841 = vmatprep.subr.mxu0 %v3107_v1 }
0x1296   :  { %2842 = vmatpush3.msra.mxu0 %v3386_v58 }
0x1297   :  { %2843 = vmatprep.subr.mxu0 %v3107_v1 }
0x1298   :  { %2844 = vmatpush3.msra.mxu0 %v3395_v59 }
0x1299   :  { %2845 = vmatprep.subr.mxu0 %v3107_v1 }
0x129a   :  { %2846 = vmatpush3.msra.mxu0 %v3400_v60 }
0x129b   :  { %2848 = vmatmul.mubr.msk.f32.vlgmr.msra.gmra.mxu0 %vm669_vm2, %v1604_v39  ;;  %2861 = vmatprep.subr.mxu0 %v3107_v1 }
0x129c   :  { %2862 = vmatpush3.msra.mxu0 %v3381_v57  ;;  %2869 = vmatprep.mubr.msk.f32.mxu0 %vm3108_vm0, %v3107_v1 }
0x129d   :  { %2863 = vmatprep.subr.mxu0 %v3107_v1 }
0x129e   :  { %2864 = vmatpush3.msra.mxu0 %v3386_v58 }
0x129f   :  { %2865 = vmatprep.subr.mxu0 %v3107_v1 }
0x12a0   :  { %2866 = vmatpush3.msra.mxu0 %v3395_v59 }
0x12a1   :  { %2867 = vmatprep.subr.mxu0 %v3107_v1 }
0x12a2   :  { %2868 = vmatpush3.msra.mxu0 %v3400_v60 }
0x12a3   :  { %2883 = vmatprep.subr.bf16.mxu0 %v3107_v1 }
0x12d0   :  { %v1374_v17 = vpop.f32.mrf.mxu0 }
0x12d1   :  { %v1375_v19 = vadd.f32 %v3458_v16, %v1374_v17 }
0x12d2   :  { %v2805_v20 = vpop.f32.mrf.mxu0 }
0x12d3   :  { %1378 = vst [vmem:[#allocation2] sm:$0x3] %v1375_v19 }
0x12da   :  { %v1904_v38 = vld [vmem:[#allocation2] sm:$0x3] }
0x12fb   :  { %v1207_v21 = vpop.permute.xlu0 %1206 }
0x12fc   :  { %1210 = vst.msk [vmem:[#allocation3 + $0xc] sm:$0x3] %vm741_vm3, %v1207_v21 }
0x12fd   :  { %v1215_v22 = vpop.permute.xlu1 %1214 }
0x12fe   :  { %2792 = vmatmul.mubr.msk.bf16.vlgmr.msra.gmra.mxu1 %vm669_vm2, %v1215_v22 }
0x12ff   :  { %2807 = vmatpush3.msra.mxu1 %v3381_v57  ;;  %2814 = vmatprep.mubr.msk.f32.mxu1 %vm3108_vm0, %v3107_v1 }
0x1300   :  { %2808 = vmatprep.subr.mxu1 %v3107_v1 }
0x1301   :  { %2809 = vmatpush3.msra.mxu1 %v3386_v58 }
0x1302   :  { %2810 = vmatprep.subr.mxu1 %v3107_v1 }
0x1303   :  { %v1754_v24 = vld [vmem:[#allocation3 + $0xc] sm:$0x3]  ;;  %2811 = vmatpush3.msra.mxu1 %v3395_v59 }
0x1304   :  { %2870 = vmatmul.mubr.msk.f32.vlgmr.msra.gmra.mxu0 %vm669_vm2, %v1754_v24  ;;  %2812 = vmatprep.subr.mxu1 %v3107_v1 }
0x1305   :  { %2884 = vmatpush3.bf16.msra.mxu0 %v3470_v23  ;;  %2887 = vmatprep.mubr.msk.bf16.mxu0 %vm3108_vm0, %v3107_v1 }
0x1306   :  { %2885 = vmatprep.subr.bf16.mxu0 %v3107_v1  ;;  %2813 = vmatpush3.msra.mxu1 %v3400_v60 }
0x1307   :  { %2828 = vmatprep.subr.mxu1 %v3107_v1 }
0x1309   :  { %2886 = vmatpush3.bf16.msra.mxu0 %v3481_v25 }
0x130a   :  { %2899 = vmatprep.subr.bf16.mxu0 %v3107_v1 }
0x130c   :  { %2888 = vmatmul.mubr.bf16.vlgmr.msra.gmra.mxu0 %v3109_v9 }
0x130d   :  { %2900 = vmatpush3.bf16.msra.mxu0 %v3470_v23  ;;  %2903 = vmatprep.mubr.msk.bf16.mxu0 %vm3108_vm0, %v3107_v1 }
0x130e   :  { %2901 = vmatprep.subr.bf16.mxu0 %v3107_v1 }
0x1311   :  { %2902 = vmatpush3.bf16.msra.mxu0 %v3481_v25 }
0x1312   :  { %2915 = vmatprep.subr.bf16.mxu0 %v3107_v1 }
0x1353   :  { %v1524_v26 = vpop.f32.mrf.mxu0 }
0x1354   :  { %v1525_v27 = vadd.f32 %v3458_v16, %v1524_v26 }
0x1355   :  { %v2827_v28 = vpop.f32.mrf.mxu0 }
0x1356   :  { %1528 = vst [vmem:[#allocation2 + $0x4] sm:$0x3] %v1525_v27 }
0x135b   :  { %v1674_v29 = vpop.f32.mrf.mxu0 }
0x135c   :  { %v1675_v30 = vadd.f32 %v3458_v16, %v1674_v29 }
0x135d   :  { %v2849_v9 = vpop.f32.mrf.mxu0 }
0x135e   :  { %1678 = vst [vmem:[#allocation2 + $0x8] sm:$0x3] %v1675_v30 }
0x13be   :  { %v1253_v32 = vpop.f32.mrf.mxu1 }
0x13bf   :  { %v1254_v7 = vadd.f32 %v1253_v32, %v1212_v31 }
0x13c0   :  { %v2793_v33 = vpop.f32.mrf.mxu1 }
0x13c1   :  { %3013 = vtanh.f32 %v1254_v7  ;;  %v2536_v49 = vmul.f32 -1.442695, %v1254_v7 }
0x13c2   :  { %v1256_v34 = vpop.f32.mrf.mxu1 }
0x13c4   :  { %v2794_v35 = vpop.f32.mrf.mxu1  ;;  %v1824_v36 = vpop.f32.mrf.mxu0 }
0x13c5   :  { %v1825_v8 = vadd.f32 %v3458_v16, %v1824_v36 }
0x13c6   :  { %v2871_v37 = vpop.f32.mrf.mxu0 }
0x13c7   :  { %1828 = vst [vmem:[#allocation2 + $0xc] sm:$0x3] %v1825_v8 }
0x13cc   :  { %v1951_v40 = vpop.f32.mrf.mxu0 }
0x13cd   :  { %v1952_v41 = vadd.f32 %v1951_v40, %v1904_v38 }
0x13ce   :  { %v3014_v42 = vpop.eup %3013  ;;  %v2889_v44 = vpop.f32.mrf.mxu0 }
0x13cf   :  { %3015 = vtanh.f32 %v1952_v41  ;;  %1268 = vrot.lane.b32.xlu0 %v3014_v42, %s3110_s3  ;;  %v2548_v50 = vmul.f32 -1.442695, %v1952_v41 }
0x13d0   :  { %v1954_v46 = vpop.f32.mrf.mxu0  ;;  %3017 = vpow2.f32 %v2536_v49 }
0x13d1   :  { %3019 = vpow2.f32 %v2548_v50 }
0x13d2   :  { %v2890_v47 = vpop.f32.mrf.mxu0 }
0x13dc   :  { %v3016_v48 = vpop.eup %3015 }
0x13dd   :  { %1966 = vrot.lane.b32.xlu1 %v3016_v48, %s3110_s3  ;;  %v3018_v51 = vpop.eup %3017 }
0x13de   :  { %v1262_v52 = vadd.f32 1.0, %v3018_v51  ;;  %v3020_v53 = vpop.eup %3019 }
0x13df   :  { %v1960_v54 = vadd.f32 1.0, %v3020_v53 }
0x13e0   :  { %3021 = vrcp.f32 %v1262_v52 }
0x13e1   :  { %3023 = vrcp.f32 %v1960_v54 }
0x13ed   :  { %v3022_v55 = vpop.eup %3021 }
0x13ee   :  { %v3024_v63 = vpop.eup %3023  ;;  %v1266_v3 = vmul.f32 %v3022_v55, %v3411_v4 }
0x13ef   :  { %v1964_v10 = vmul.f32 0.0, %v3024_v63 }
0x1441   :  { %v1269_v56 = vpop.permute.xlu0 %1268 }
0x1442   :  { %v1271_v62 = vmul.f32 %v3022_v55, %v1269_v56 }
0x1444   :  { %1273 = vrot.lane.b32.xlu0 %v1271_v62, %s3111_s17 }
0x144f   :  { %v1967_v0 = vpop.permute.xlu1 %1966 }
0x1450   :  { %v1969_v2 = vmul.f32 %v3024_v63, %v1967_v0 }
0x1452   :  { %1971 = vrot.lane.b32.xlu1 %v1969_v2, %s3111_s17 }
0x14b6   :  { %v1274_v5 = vpop.permute.xlu0 %1273 }
0x14b7   :  { %v1276_v6 = vadd.f32 %v1274_v5, %v1266_v3 }
0x14b9   :  { %3025 = vtanh.f32 %v1276_v6 }
0x14c4   :  { %v1972_v45 = vpop.permute.xlu1 %1971 }
0x14c5   :  { %v3505_v11 = vadd.f32 %v1972_v45, %v1964_v10 }
0x14c6   :  { %v3026_v12 = vpop.eup %3025 }
0x14c7   :  { %3027 = vtanh.f32 %v3505_v11  ;;  %1279 = vrot.lane.b32.xlu0 %v3026_v12, %s3110_s3 }
0x14cb   :  { %816 = vrot.lane.b32.xlu0 %v3309_v18, %s3111_s17 }
0x14cf   :  { %1128 = vrot.lane.b32.xlu0 %v3369_v43, %s3111_s17 }
0x14d4   :  { %v3028_v13 = vpop.eup %3027 }
0x14d5   :  { %1977 = vrot.lane.b32.xlu1 %v3028_v13, %s3110_s3 }
0x14d9   :  { %972 = vrot.lane.b32.xlu1 %v3339_v61, %s3111_s17 }
0x1539   :  { %v1280_v4 = vpop.permute.xlu0 %1279 }
0x153a   :  { %v1282_v14 = vmul.f32 %v3022_v55, %v1280_v4  ;;  %v2054_v55 = vld [vmem:[#allocation2 + $0x4] sm:$0x3] }
0x153c   :  { %1284 = vrot.lane.b32.xlu1 %v1282_v14, %s3111_s17 }
0x153d   :  { %v817_v15 = vpop.permute.xlu0 %816 }
0x153e   :  { %820 = vst.msk [vmem:[#allocation3 + $0x2] sm:$0x3] %vm741_vm3, %v817_v15 }
0x1541   :  { %v1129_v39 = vpop.permute.xlu0 %1128 }
0x1542   :  { %1132 = vst.msk [vmem:[#allocation3 + $0xa] sm:$0x3] %vm741_vm3, %v1129_v39 }
0x1545   :  { %v1379_v18 = vld [vmem:[#allocation3 + $0x2] sm:$0x3] }
0x1546   :  { %2815 = vmatmul.mubr.msk.f32.vlgmr.msra.gmra.mxu1 %vm669_vm2, %v1379_v18 }
0x1547   :  { %v1978_v43 = vpop.permute.xlu1 %1977  ;;  %2829 = vmatpush3.msra.mxu1 %v3381_v57  ;;  %2836 = vmatprep.mubr.msk.f32.mxu1 %vm3108_vm0, %v3107_v1 }
0x1548   :  { %v1980_v61 = vmul.f32 %v3024_v63, %v1978_v43  ;;  %2830 = vmatprep.subr.mxu1 %v3107_v1 }
0x1549   :  { %2831 = vmatpush3.msra.mxu1 %v3386_v58  ;;  %v1679_v21 = vld [vmem:[#allocation3 + $0xa] sm:$0x3] }
0x154a   :  { %v1981_v17 = vpack.c.bf16 %v1980_v61, %v1980_v61  ;;  %2832 = vmatprep.subr.mxu1 %v3107_v1 }
0x154b   :  { %v973_v19 = vpop.permute.xlu1 %972  ;;  %2833 = vmatpush3.msra.mxu1 %v3395_v59 }
0x154c   :  { %976 = vst.msk [vmem:[#allocation3 + $0x6] sm:$0x3] %vm741_vm3, %v973_v19  ;;  %1984 = vrot.lane.b32.xlu0 %v1981_v17, %s3111_s17  ;;  %2834 = vmatprep.subr.mxu1 %v3107_v1 }
0x154d   :  { %2835 = vmatpush3.msra.mxu1 %v3400_v60 }
0x154e   :  { %2850 = vmatprep.subr.mxu1 %v3107_v1 }
0x1553   :  { %v1529_v20 = vld [vmem:[#allocation3 + $0x6] sm:$0x3] }
0x1554   :  { %2837 = vmatmul.mubr.msk.f32.vlgmr.msra.gmra.mxu1 %vm669_vm2, %v1529_v20 }
0x1555   :  { %2851 = vmatpush3.msra.mxu1 %v3381_v57  ;;  %2858 = vmatprep.mubr.msk.f32.mxu1 %vm3108_vm0, %v3107_v1 }
0x1556   :  { %2852 = vmatprep.subr.mxu1 %v3107_v1 }
0x1557   :  { %2853 = vmatpush3.msra.mxu1 %v3386_v58 }
0x1558   :  { %2854 = vmatprep.subr.mxu1 %v3107_v1 }
0x1559   :  { %2855 = vmatpush3.msra.mxu1 %v3395_v59 }
0x155a   :  { %2856 = vmatprep.subr.mxu1 %v3107_v1 }
0x155b   :  { %2857 = vmatpush3.msra.mxu1 %v3400_v60 }
0x155c   :  { %2859 = vmatmul.mubr.msk.f32.vlgmr.msra.gmra.mxu1 %vm669_vm2, %v1679_v21  ;;  %2872 = vmatprep.subr.mxu1 %v3107_v1 }
0x155d   :  { %2873 = vmatpush3.msra.mxu1 %v3381_v57  ;;  %2880 = vmatprep.mubr.msk.f32.mxu1 %vm3108_vm0, %v3107_v1 }
0x155e   :  { %2874 = vmatprep.subr.mxu1 %v3107_v1 }
0x155f   :  { %2875 = vmatpush3.msra.mxu1 %v3386_v58 }
0x1560   :  { %2876 = vmatprep.subr.mxu1 %v3107_v1 }
0x1561   :  { %2877 = vmatpush3.msra.mxu1 %v3395_v59 }
0x1562   :  { %2878 = vmatprep.subr.mxu1 %v3107_v1 }
0x1563   :  { %2879 = vmatpush3.msra.mxu1 %v3400_v60 }
0x1564   :  { %2891 = vmatprep.subr.bf16.mxu1 %v3107_v1 }
0x15ae   :  { %v1285_v22 = vpop.permute.xlu1 %1284 }
0x15af   :  { %1288 = vst.msk [vmem:[#allocation3 + $0xe] sm:$0x3] %vm741_vm3, %v1285_v22 }
0x15b6   :  { %v1829_v57 = vld [vmem:[#allocation3 + $0xe] sm:$0x3] }
0x15b7   :  { %2881 = vmatmul.mubr.msk.f32.vlgmr.msra.gmra.mxu1 %vm669_vm2, %v1829_v57 }
0x15b8   :  { %2892 = vmatpush3.bf16.msra.mxu1 %v3470_v23  ;;  %2895 = vmatprep.mubr.msk.bf16.mxu1 %vm3108_vm0, %v3107_v1 }
0x15b9   :  { %2893 = vmatprep.subr.bf16.mxu1 %v3107_v1 }
0x15bc   :  { %2894 = vmatpush3.bf16.msra.mxu1 %v3481_v25 }
0x15bd   :  { %2907 = vmatprep.subr.bf16.mxu1 %v3107_v1 }
0x15be   :  { %v1985_v58 = vpop.permute.xlu0 %1984 }
0x15bf   :  { %2896 = vmatmul.mubr.msk.bf16.vlgmr.msra.gmra.mxu1 %vm669_vm2, %v1985_v58 }
0x15c0   :  { %2908 = vmatpush3.bf16.msra.mxu1 %v3470_v23  ;;  %2911 = vmatprep.mubr.msk.bf16.mxu1 %vm3108_vm0, %v3107_v1 }
0x15c1   :  { %2909 = vmatprep.subr.bf16.mxu1 %v3107_v1 }
0x15c4   :  { %2910 = vmatpush3.bf16.msra.mxu1 %v3481_v25 }
0x15c5   :  { %2923 = vmatprep.subr.bf16.mxu1 %v3107_v1 }
0x1606   :  { %v1449_v59 = vpop.f32.mrf.mxu1 }
0x1607   :  { %v1450_v60 = vadd.f32 %v3458_v16, %v1449_v59 }
0x1608   :  { %v2816_v24 = vpop.f32.mrf.mxu1 }
0x1609   :  { %1453 = vst [vmem:[#allocation2 + $0x2] sm:$0x3] %v1450_v60 }
0x1610   :  { %v1982_v33 = vld [vmem:[#allocation2 + $0x2] sm:$0x3] }
0x1614   :  { %v1599_v26 = vpop.f32.mrf.mxu1 }
0x1615   :  { %v1600_v27 = vadd.f32 %v3458_v16, %v1599_v26 }
0x1616   :  { %v2838_v28 = vpop.f32.mrf.mxu1 }
0x1617   :  { %1603 = vst [vmem:[#allocation2 + $0x6] sm:$0x3] %v1600_v27 }
0x161c   :  { %v1749_v29 = vpop.f32.mrf.mxu1 }
0x161d   :  { %v1750_v30 = vadd.f32 %v3458_v16, %v1749_v29 }
0x161e   :  { %v2860_v9 = vpop.f32.mrf.mxu1  ;;  %v2126_v17 = vld [vmem:[#allocation2 + $0x6] sm:$0x3] }
0x161f   :  { %1753 = vst [vmem:[#allocation2 + $0xa] sm:$0x3] %v1750_v30 }
0x1677   :  { %v1899_v31 = vpop.f32.mrf.mxu1 }
0x1678   :  { %v1900_v32 = vadd.f32 %v3458_v16, %v1899_v31 }
0x1679   :  { %v2882_v7 = vpop.f32.mrf.mxu1 }
0x167a   :  { %1903 = vst [vmem:[#allocation2 + $0xe] sm:$0x3] %v1900_v32 }
0x167f   :  { %v2023_v34 = vpop.f32.mrf.mxu1 }
0x1680   :  { %v2024_v35 = vadd.f32 %v2023_v34, %v1982_v33 }
0x1681   :  { %v2897_v36 = vpop.f32.mrf.mxu1 }
0x1682   :  { %3029 = vtanh.f32 %v2024_v35  ;;  %v2550_v40 = vmul.f32 -1.442695, %v2024_v35  ;;  %v2198_v35 = vld [vmem:[#allocation2 + $0x8] sm:$0x3] }
0x1683   :  { %v2026_v8 = vpop.f32.mrf.mxu1 }
0x1684   :  { %3031 = vpow2.f32 %v2550_v40 }
0x1685   :  { %v2898_v37 = vpop.f32.mrf.mxu1 }
0x168f   :  { %v3030_v38 = vpop.eup %3029 }
0x1690   :  { %2038 = vrot.lane.b32.xlu1 %v3030_v38, %s3110_s3 }
0x1691   :  { %v3032_v41 = vpop.eup %3031 }
0x1692   :  { %v2032_v42 = vadd.f32 1.0, %v3032_v41 }
0x1694   :  { %3033 = vrcp.f32 %v2032_v42 }
0x16a1   :  { %v3034_v44 = vpop.eup %3033 }
0x16a2   :  { %v2036_v47 = vmul.f32 %v3034_v44, %v3505_v11 }
0x1702   :  { %v2039_v46 = vpop.permute.xlu1 %2038 }
0x1703   :  { %v2041_v16 = vmul.f32 %v3034_v44, %v2039_v46 }
0x1705   :  { %2043 = vrot.lane.b32.xlu0 %v2041_v16, %s3111_s17 }
0x1777   :  { %v2044_v48 = vpop.permute.xlu0 %2043 }
0x1778   :  { %v2046_v49 = vadd.f32 %v2044_v48, %v2036_v47 }
0x177a   :  { %3035 = vtanh.f32 %v2046_v49 }
0x1787   :  { %v3036_v50 = vpop.eup %3035 }
0x1788   :  { %2049 = vrot.lane.b32.xlu1 %v3036_v50, %s3110_s3 }
0x17fa   :  { %v2050_v51 = vpop.permute.xlu1 %2049 }
0x17fb   :  { %v2052_v52 = vmul.f32 %v3034_v44, %v2050_v51 }
0x17fd   :  { %v2053_v53 = vpack.c.bf16 %v2052_v52, %v2052_v52 }
0x17ff   :  { %2056 = vrot.lane.b32.xlu0 %v2053_v53, %s3111_s17 }
0x1871   :  { %v2057_v54 = vpop.permute.xlu0 %2056 }
0x1872   :  { %2904 = vmatmul.mubr.msk.bf16.vlgmr.msra.gmra.mxu0 %vm669_vm2, %v2057_v54 }
0x1873   :  { %2916 = vmatpush3.bf16.msra.mxu0 %v3470_v23  ;;  %2919 = vmatprep.mubr.msk.bf16.mxu0 %vm3108_vm0, %v3107_v1 }
0x1874   :  { %2917 = vmatprep.subr.bf16.mxu0 %v3107_v1 }
0x1877   :  { %2918 = vmatpush3.bf16.msra.mxu0 %v3481_v25 }
0x1878   :  { %2931 = vmatprep.subr.bf16.mxu0 %v3107_v1 }
0x1932   :  { %v2095_v56 = vpop.f32.mrf.mxu0 }
0x1933   :  { %v2096_v62 = vadd.f32 %v2095_v56, %v2054_v55 }
0x1934   :  { %v2905_v63 = vpop.f32.mrf.mxu0 }
0x1935   :  { %3037 = vtanh.f32 %v2096_v62  ;;  %v2552_v5 = vmul.f32 -1.442695, %v2096_v62  ;;  %v2270_v62 = vld [vmem:[#allocation2 + $0xa] sm:$0x3] }
0x1936   :  { %v2098_v0 = vpop.f32.mrf.mxu0 }
0x1937   :  { %3039 = vpow2.f32 %v2552_v5 }
0x1938   :  { %v2906_v2 = vpop.f32.mrf.mxu0 }
0x1942   :  { %v3038_v3 = vpop.eup %3037 }
0x1943   :  { %2110 = vrot.lane.b32.xlu1 %v3038_v3, %s3110_s3 }
0x1944   :  { %v3040_v6 = vpop.eup %3039 }
0x1945   :  { %v2104_v10 = vadd.f32 1.0, %v3040_v6 }
0x1947   :  { %3041 = vrcp.f32 %v2104_v10 }
0x1954   :  { %v3042_v45 = vpop.eup %3041 }
0x1955   :  { %v2108_v13 = vmul.f32 %v3042_v45, %v2046_v49 }
0x19b5   :  { %v2111_v11 = vpop.permute.xlu1 %2110 }
0x19b6   :  { %v2113_v12 = vmul.f32 %v3042_v45, %v2111_v11 }
0x19b8   :  { %2115 = vrot.lane.b32.xlu0 %v2113_v12, %s3111_s17 }
0x1a2a   :  { %v2116_v4 = vpop.permute.xlu0 %2115 }
0x1a2b   :  { %v2118_v14 = vadd.f32 %v2116_v4, %v2108_v13 }
0x1a2d   :  { %3043 = vtanh.f32 %v2118_v14 }
0x1a3a   :  { %v3044_v15 = vpop.eup %3043 }
0x1a3b   :  { %2121 = vrot.lane.b32.xlu1 %v3044_v15, %s3110_s3 }
0x1aad   :  { %v2122_v39 = vpop.permute.xlu1 %2121 }
0x1aae   :  { %v2124_v18 = vmul.f32 %v3042_v45, %v2122_v39 }
0x1ab0   :  { %v2125_v43 = vpack.c.bf16 %v2124_v18, %v2124_v18 }
0x1ab2   :  { %2128 = vrot.lane.b32.xlu0 %v2125_v43, %s3111_s17 }
0x1b24   :  { %v2129_v61 = vpop.permute.xlu0 %2128 }
0x1b25   :  { %2912 = vmatmul.mubr.msk.bf16.vlgmr.msra.gmra.mxu1 %vm669_vm2, %v2129_v61  ;;  %v2342_v61 = vld [vmem:[#allocation2 + $0xc] sm:$0x3] }
0x1b26   :  { %2924 = vmatpush3.bf16.msra.mxu1 %v3470_v23  ;;  %2927 = vmatprep.mubr.msk.bf16.mxu1 %vm3108_vm0, %v3107_v1 }
0x1b27   :  { %2925 = vmatprep.subr.bf16.mxu1 %v3107_v1 }
0x1b2a   :  { %2926 = vmatpush3.bf16.msra.mxu1 %v3481_v25 }
0x1b2b   :  { %2939 = vmatprep.subr.bf16.mxu1 %v3107_v1 }
0x1be5   :  { %v2167_v19 = vpop.f32.mrf.mxu1 }
0x1be6   :  { %v2168_v20 = vadd.f32 %v2167_v19, %v2126_v17 }
0x1be7   :  { %v2913_v21 = vpop.f32.mrf.mxu1 }
0x1be8   :  { %3045 = vtanh.f32 %v2168_v20  ;;  %v2554_v59 = vmul.f32 -1.442695, %v2168_v20 }
0x1be9   :  { %v2170_v22 = vpop.f32.mrf.mxu1 }
0x1bea   :  { %3047 = vpow2.f32 %v2554_v59 }
0x1beb   :  { %v2914_v57 = vpop.f32.mrf.mxu1 }
0x1bf5   :  { %v3046_v58 = vpop.eup %3045 }
0x1bf6   :  { %2182 = vrot.lane.b32.xlu1 %v3046_v58, %s3110_s3 }
0x1bf7   :  { %v3048_v60 = vpop.eup %3047 }
0x1bf8   :  { %v2176_v24 = vadd.f32 1.0, %v3048_v60 }
0x1bfa   :  { %3049 = vrcp.f32 %v2176_v24 }
0x1c07   :  { %v3050_v26 = vpop.eup %3049 }
0x1c08   :  { %v2180_v29 = vmul.f32 %v3050_v26, %v2118_v14 }
0x1c68   :  { %v2183_v27 = vpop.permute.xlu1 %2182 }
0x1c69   :  { %v2185_v28 = vmul.f32 %v3050_v26, %v2183_v27 }
0x1c6b   :  { %2187 = vrot.lane.b32.xlu0 %v2185_v28, %s3111_s17 }
0x1cdd   :  { %v2188_v30 = vpop.permute.xlu0 %2187 }
0x1cde   :  { %v2190_v9 = vadd.f32 %v2188_v30, %v2180_v29 }
0x1ce0   :  { %3051 = vtanh.f32 %v2190_v9 }
0x1ced   :  { %v3052_v31 = vpop.eup %3051 }
0x1cee   :  { %2193 = vrot.lane.b32.xlu1 %v3052_v31, %s3110_s3 }
0x1d60   :  { %v2194_v32 = vpop.permute.xlu1 %2193 }
0x1d61   :  { %v2196_v7 = vmul.f32 %v3050_v26, %v2194_v32 }
0x1d63   :  { %v2197_v33 = vpack.c.bf16 %v2196_v7, %v2196_v7 }
0x1d65   :  { %2200 = vrot.lane.b32.xlu0 %v2197_v33, %s3111_s17 }
0x1dd7   :  { %v2201_v34 = vpop.permute.xlu0 %2200 }
0x1dd8   :  { %2920 = vmatmul.mubr.msk.bf16.vlgmr.msra.gmra.mxu0 %vm669_vm2, %v2201_v34  ;;  %v2414_v34 = vld [vmem:[#allocation2 + $0xe] sm:$0x3] }
0x1dd9   :  { %2932 = vmatpush3.bf16.msra.mxu0 %v3470_v23  ;;  %2935 = vmatprep.mubr.msk.bf16.mxu0 %vm3108_vm0, %v3107_v1 }
0x1dda   :  { %2933 = vmatprep.subr.bf16.mxu0 %v3107_v1 }
0x1ddd   :  { %2934 = vmatpush3.bf16.msra.mxu0 %v3481_v25 }
0x1e98   :  { %v2239_v36 = vpop.f32.mrf.mxu0 }
0x1e99   :  { %v2240_v8 = vadd.f32 %v2239_v36, %v2198_v35 }
0x1e9a   :  { %v2921_v37 = vpop.f32.mrf.mxu0 }
0x1e9b   :  { %3053 = vtanh.f32 %v2240_v8  ;;  %v2556_v42 = vmul.f32 -1.442695, %v2240_v8 }
0x1e9c   :  { %v2242_v38 = vpop.f32.mrf.mxu0 }
0x1e9d   :  { %3055 = vpow2.f32 %v2556_v42 }
0x1e9e   :  { %v2922_v40 = vpop.f32.mrf.mxu0 }
0x1ea8   :  { %v3054_v41 = vpop.eup %3053 }
0x1ea9   :  { %2254 = vrot.lane.b32.xlu1 %v3054_v41, %s3110_s3 }
0x1eaa   :  { %v3056_v44 = vpop.eup %3055 }
0x1eab   :  { %v2248_v46 = vadd.f32 1.0, %v3056_v44 }
0x1ead   :  { %3057 = vrcp.f32 %v2248_v46 }
0x1eba   :  { %v3058_v16 = vpop.eup %3057 }
0x1ebb   :  { %v2252_v49 = vmul.f32 %v3058_v16, %v2190_v9 }
0x1f1b   :  { %v2255_v47 = vpop.permute.xlu1 %2254 }
0x1f1c   :  { %v2257_v48 = vmul.f32 %v3058_v16, %v2255_v47 }
0x1f1e   :  { %2259 = vrot.lane.b32.xlu0 %v2257_v48, %s3111_s17 }
0x1f90   :  { %v2260_v50 = vpop.permute.xlu0 %2259 }
0x1f91   :  { %v2262_v51 = vadd.f32 %v2260_v50, %v2252_v49 }
0x1f93   :  { %3059 = vtanh.f32 %v2262_v51 }
0x1fa0   :  { %v3060_v52 = vpop.eup %3059 }
0x1fa1   :  { %2265 = vrot.lane.b32.xlu1 %v3060_v52, %s3110_s3 }
0x2013   :  { %v2266_v53 = vpop.permute.xlu1 %2265 }
0x2014   :  { %v2268_v54 = vmul.f32 %v3058_v16, %v2266_v53 }
0x2016   :  { %v2269_v55 = vpack.c.bf16 %v2268_v54, %v2268_v54 }
0x2018   :  { %2272 = vrot.lane.b32.xlu0 %v2269_v55, %s3111_s17 }
0x208a   :  { %v2273_v56 = vpop.permute.xlu0 %2272 }
0x208b   :  { %2928 = vmatmul.mubr.msk.bf16.vlgmr.msra.gmra.mxu1 %vm669_vm2, %v2273_v56 }
0x208c   :  { %2940 = vmatpush3.bf16.msra.mxu1 %v3470_v23  ;;  %2943 = vmatprep.mubr.msk.bf16.mxu1 %vm3108_vm0, %v3107_v1 }
0x208d   :  { %2941 = vmatprep.subr.bf16.mxu1 %v3107_v1 }
0x2090   :  { %2942 = vmatpush3.bf16.msra.mxu1 %v3481_v25 }
0x214b   :  { %v2311_v63 = vpop.f32.mrf.mxu1 }
0x214c   :  { %v2312_v0 = vadd.f32 %v2311_v63, %v2270_v62 }
0x214d   :  { %v2929_v2 = vpop.f32.mrf.mxu1 }
0x214e   :  { %3061 = vtanh.f32 %v2312_v0  ;;  %v2558_v10 = vmul.f32 -1.442695, %v2312_v0 }
0x214f   :  { %v2314_v3 = vpop.f32.mrf.mxu1 }
0x2150   :  { %3063 = vpow2.f32 %v2558_v10 }
0x2151   :  { %v2930_v5 = vpop.f32.mrf.mxu1 }
0x215b   :  { %v3062_v6 = vpop.eup %3061 }
0x215c   :  { %2326 = vrot.lane.b32.xlu1 %v3062_v6, %s3110_s3 }
0x215d   :  { %v3064_v23 = vpop.eup %3063 }
0x215e   :  { %v2320_v45 = vadd.f32 1.0, %v3064_v23 }
0x2160   :  { %3065 = vrcp.f32 %v2320_v45 }
0x216d   :  { %v3066_v11 = vpop.eup %3065 }
0x216e   :  { %v2324_v25 = vmul.f32 %v3066_v11, %v2262_v51 }
0x21ce   :  { %v2327_v12 = vpop.permute.xlu1 %2326 }
0x21cf   :  { %v2329_v1 = vmul.f32 %v3066_v11, %v2327_v12 }
0x21d1   :  { %2331 = vrot.lane.b32.xlu0 %v2329_v1, %s3111_s17 }
0x2243   :  { %v2332_v13 = vpop.permute.xlu0 %2331 }
0x2244   :  { %v2334_v4 = vadd.f32 %v2332_v13, %v2324_v25 }
0x2246   :  { %3067 = vtanh.f32 %v2334_v4 }
0x2253   :  { %v3068_v14 = vpop.eup %3067 }
0x2254   :  { %2337 = vrot.lane.b32.xlu1 %v3068_v14, %s3110_s3 }
0x22c6   :  { %v2338_v15 = vpop.permute.xlu1 %2337 }
0x22c7   :  { %v2340_v39 = vmul.f32 %v3066_v11, %v2338_v15 }
0x22c9   :  { %v2341_v18 = vpack.c.bf16 %v2340_v39, %v2340_v39 }
0x22cb   :  { %2344 = vrot.lane.b32.xlu0 %v2341_v18, %s3111_s17 }
0x233d   :  { %v2345_v43 = vpop.permute.xlu0 %2344 }
0x233e   :  { %2936 = vmatmul.mubr.msk.bf16.vlgmr.msra.gmra.mxu0 %vm669_vm2, %v2345_v43 }
0x23fe   :  { %v2383_v17 = vpop.f32.mrf.mxu0 }
0x23ff   :  { %v2384_v19 = vadd.f32 %v2383_v17, %v2342_v61 }
0x2400   :  { %v2937_v20 = vpop.f32.mrf.mxu0 }
0x2401   :  { %3069 = vtanh.f32 %v2384_v19  ;;  %v2560_v58 = vmul.f32 -1.442695, %v2384_v19 }
0x2402   :  { %v2386_v21 = vpop.f32.mrf.mxu0 }
0x2403   :  { %3071 = vpow2.f32 %v2560_v58 }
0x2404   :  { %v2938_v22 = vpop.f32.mrf.mxu0 }
0x240e   :  { %v3070_v57 = vpop.eup %3069 }
0x240f   :  { %2398 = vrot.lane.b32.xlu1 %v3070_v57, %s3110_s3 }
0x2410   :  { %v3072_v59 = vpop.eup %3071 }
0x2411   :  { %v2392_v60 = vadd.f32 1.0, %v3072_v59 }
0x2413   :  { %3073 = vrcp.f32 %v2392_v60 }
0x2420   :  { %v3074_v24 = vpop.eup %3073 }
0x2421   :  { %v2396_v28 = vmul.f32 %v3074_v24, %v2334_v4 }
0x2481   :  { %v2399_v26 = vpop.permute.xlu1 %2398 }
0x2482   :  { %v2401_v27 = vmul.f32 %v3074_v24, %v2399_v26 }
0x2484   :  { %2403 = vrot.lane.b32.xlu0 %v2401_v27, %s3111_s17 }
0x24f6   :  { %v2404_v29 = vpop.permute.xlu0 %2403 }
0x24f7   :  { %v2406_v30 = vadd.f32 %v2404_v29, %v2396_v28 }
0x24f9   :  { %3075 = vtanh.f32 %v2406_v30 }
0x2506   :  { %v3076_v9 = vpop.eup %3075 }
0x2507   :  { %2409 = vrot.lane.b32.xlu1 %v3076_v9, %s3110_s3 }
0x2579   :  { %v2410_v31 = vpop.permute.xlu1 %2409 }
0x257a   :  { %v2412_v32 = vmul.f32 %v3074_v24, %v2410_v31 }
0x257c   :  { %v2413_v7 = vpack.c.bf16 %v2412_v32, %v2412_v32 }
0x257e   :  { %2416 = vrot.lane.b32.xlu0 %v2413_v7, %s3111_s17 }
0x25f0   :  { %v2417_v33 = vpop.permute.xlu0 %2416 }
0x25f1   :  { %2944 = vmatmul.mubr.msk.bf16.vlgmr.msra.gmra.mxu1 %vm669_vm2, %v2417_v33 }
0x26b1   :  { %v2455_v35 = vpop.f32.mrf.mxu1 }
0x26b2   :  { %v2456_v36 = vadd.f32 %v2455_v35, %v2414_v34 }
0x26b3   :  { %v2945_v8 = vpop.f32.mrf.mxu1 }
0x26b4   :  { %3077 = vtanh.f32 %v2456_v36  ;;  %v2562_v41 = vmul.f32 -1.442695, %v2456_v36 }
0x26b5   :  { %v2458_v37 = vpop.f32.mrf.mxu1 }
0x26b6   :  { %3079 = vpow2.f32 %v2562_v41 }
0x26b7   :  { %v2946_v38 = vpop.f32.mrf.mxu1 }
0x26c1   :  { %v3078_v40 = vpop.eup %3077 }
0x26c2   :  { %2470 = vrot.lane.b32.xlu1 %v3078_v40, %s3110_s3 }
0x26c3   :  { %v3080_v42 = vpop.eup %3079 }
0x26c4   :  { %v2464_v44 = vadd.f32 1.0, %v3080_v42 }
0x26c6   :  { %3081 = vrcp.f32 %v2464_v44 }
0x26d3   :  { %v3082_v46 = vpop.eup %3081 }
0x26d4   :  { %v2468_v48 = vmul.f32 %v3082_v46, %v2406_v30 }
0x2734   :  { %v2471_v16 = vpop.permute.xlu1 %2470 }
0x2735   :  { %v2473_v47 = vmul.f32 %v3082_v46, %v2471_v16 }
0x2737   :  { %2475 = vrot.lane.b32.xlu0 %v2473_v47, %s3111_s17 }
0x27a9   :  { %v2476_v49 = vpop.permute.xlu0 %2475 }
0x27aa   :  { %v2478_v50 = vadd.f32 %v2476_v49, %v2468_v48 }
0x27ac   :  { %3083 = vtanh.f32 %v2478_v50 }
0x27b9   :  { %v3084_v51 = vpop.eup %3083 }
0x27ba   :  { %2481 = vrot.lane.b32.xlu1 %v3084_v51, %s3110_s3 }
0x282c   :  { %v2482_v52 = vpop.permute.xlu1 %2481 }
0x282d   :  { %v2484_v53 = vmul.f32 %v3082_v46, %v2482_v52 }
0x282f   :  { %2486 = vrot.lane.b32.xlu0 %v2484_v53, %s3111_s17 }
0x28a1   :  { %v2487_v54 = vpop.permute.xlu0 %2486 }
0x28a2   :  { %2489 = vst.msk [vmem:[#allocation4] sm:$0x3] %vm741_vm3, %v2487_v54 }
0x28a3   :  { %3096 = shalt.err (!%p3093_p4)
}
0x28a4   :  { %2499 = dma.vmem_to_hbm [thread:$0]  %s2497_s13, 32, %s3641_s7, [#allocation5]  }
0x28a5   :  { %3105 = dma.done.wait [#allocation5], 32  }
0x28a6   :  { %3106 = vsyncadd [#allocation5], 4294967264 }
0x28a7   :  { %2503 = vsyncpa [#allocation5], 1 }

</bundles_post_ra>
